<compile_context>
chip_gen: v7x
topology: tpu7x:2x2x1
jax: 0.10.0
libtpu: 0.0.40
codegen_flags: <defaults>
</compile_context>

<pallas_src>
import jax
import jax.numpy as jnp
from jax.experimental import pallas as pl
from jax.experimental.pallas import tpu as pltpu

EPS = 1e-5  # nn.BatchNorm2d default eps


# --------------------------------------------------------------------------- kernels
def _conv3x3_stats_kernel(xp_ref, w_ref, y_ref, stats_ref):
    """3x3/pad-1/stride-1 conv for one image tile + per-tile channel sum / sum-of-squares.

    xp_ref:    (1, H+2, W+2, Cin)  bf16  halo'd (pre-padded) input tile
    w_ref:     (9*Cin, Cout)       bf16  folded conv weights (tap-major, channel-fast)
    y_ref:     (1, H, W, Cout)     f32   raw conv output
    stats_ref: (1, 2, Cout)        f32   row0 = sum(y), row1 = sum(y*y) over this tile
    """
    cin = xp_ref.shape[3]
    _, h, w, cout = y_ref.shape

    # Layout-manipulating ops (shifted slices, reshape, concat) in f32 for robust lowering.
    xt = xp_ref[...].astype(jnp.float32)
    taps = [xt[0, dy:dy + h, dx:dx + w, :].reshape(h * w, cin)
            for dy in range(3) for dx in range(3)]
    patches = jnp.concatenate(taps, axis=1)                  # (H*W, 9*Cin)

    # Single MXU matmul with K = 9*Cin, bf16 inputs, f32 accumulation.
    y = jnp.dot(patches.astype(jnp.bfloat16), w_ref[...],
                preferred_element_type=jnp.float32)          # (H*W, Cout) f32

    y_ref[...] = y.reshape(1, h, w, cout).astype(y_ref.dtype)
    s = jnp.sum(y, axis=0, keepdims=True)
    ss = jnp.sum(y * y, axis=0, keepdims=True)
    stats_ref[...] = jnp.concatenate([s, ss], axis=0)[None]  # (1, 2, Cout)


def _bn_relu_kernel(y_ref, sc_ref, sh_ref, o_ref):
    """Lane-dense normalize + ReLU: o = relu(y * scale + shift)."""
    o_ref[...] = jnp.maximum(y_ref[...] * sc_ref[...] + sh_ref[...], 0.0).astype(o_ref.dtype)


def _bn_add_relu_kernel(y_ref, sc_ref, sh_ref, res_ref, o_ref):
    """Lane-dense normalize + residual add + ReLU."""
    v = y_ref[...] * sc_ref[...] + sh_ref[...] + res_ref[...]
    o_ref[...] = jnp.maximum(v, 0.0).astype(o_ref.dtype)


# --------------------------------------------------------------------------- stage wrappers
def _conv3x3_stats(xp, w_folded, h, w, cout):
    """Tiled conv (grid over images) producing raw conv output + per-tile BN partial stats."""
    n = xp.shape[0]
    cin = xp.shape[-1]
    return pl.pallas_call(
        _conv3x3_stats_kernel,
        out_shape=(jax.ShapeDtypeStruct((n, h, w, cout), jnp.float32),
                   jax.ShapeDtypeStruct((n, 2, cout), jnp.float32)),
        grid=(n,),
        in_specs=[pl.BlockSpec((1, h + 2, w + 2, cin), lambda i: (i, 0, 0, 0)),
                  pl.BlockSpec((9 * cin, cout), lambda i: (0, 0))],   # weights stay resident
        out_specs=(pl.BlockSpec((1, h, w, cout), lambda i: (i, 0, 0, 0)),
                   pl.BlockSpec((1, 2, cout), lambda i: (i, 0, 0))),
        compiler_params=pltpu.CompilerParams(dimension_semantics=("parallel",)),
    )(xp, w_folded)


def _bn_scale_shift(stats, gamma, beta, count):
    """Tiny cross-tile reduction: fold BN batch stats + affine into per-channel scale/shift."""
    sums = jnp.sum(stats, axis=0)                             # (2, C)
    mean = sums[0] / count
    var = jnp.maximum(sums[1] / count - mean * mean, 0.0)     # biased variance (BN training)
    scale = gamma * jax.lax.rsqrt(var + EPS)
    shift = beta - mean * scale
    return scale, shift


def _bn_act(y4d, scale, shift, out_dtype, residual=None):
    """Lane-dense normalize + ReLU (+ residual), operating on (N, H, W*C) rows."""
    n, h, w, c = y4d.shape
    wc = w * c
    y = y4d.reshape(n, h, wc)
    sc = jnp.tile(scale, w).reshape(1, 1, wc)                 # per-channel, repeated over W
    sh = jnp.tile(shift, w).reshape(1, 1, wc)

    row_spec = pl.BlockSpec((1, h, wc), lambda i: (i, 0, 0))
    vec_spec = pl.BlockSpec((1, 1, wc), lambda i: (0, 0, 0))
    if residual is None:
        kernel = _bn_relu_kernel
        in_specs = [row_spec, vec_spec, vec_spec]
        args = (y, sc, sh)
    else:
        kernel = _bn_add_relu_kernel
        in_specs = [row_spec, vec_spec, vec_spec, row_spec]
        args = (y, sc, sh, residual.reshape(n, h, wc))

    out = pl.pallas_call(
        kernel,
        out_shape=jax.ShapeDtypeStruct((n, h, wc), out_dtype),
        grid=(n,),
        in_specs=in_specs,
        out_specs=row_spec,
        compiler_params=pltpu.CompilerParams(dimension_semantics=("parallel",)),
    )(*args)
    return out.reshape(n, h, w, c)


# --------------------------------------------------------------------------- forward
def residual_block_forward(x_nchw, w1_hwio, w2_hwio, g1, b1, g2, b2):
    """ResidualBlock forward (stride=[1,1], downsample=None, BN=True, residual_add=True)."""
    n, c, h, w = x_nchw.shape
    cout = w1_hwio.shape[-1]
    x = jnp.transpose(x_nchw, (0, 2, 3, 1))                   # NCHW -> NHWC (f32)

    # Fold 3x3 weights into (9*Cin, Cout), bf16 for the MXU fast path.
    w1f = w1_hwio.reshape(9 * c, cout).astype(jnp.bfloat16)
    w2f = w2_hwio.reshape(9 * cout, cout).astype(jnp.bfloat16)

    # ---- stage 1: conv -> BN(batch stats) -> ReLU
    xp = jnp.pad(x.astype(jnp.bfloat16), ((0, 0), (1, 1), (1, 1), (0, 0)))
    y1, st1 = _conv3x3_stats(xp, w1f, h, w, cout)
    sc1, sh1 = _bn_scale_shift(st1, g1, b1, n * h * w)
    a1 = _bn_act(y1, sc1, sh1, jnp.bfloat16)                  # bf16 activation at rest

    # ---- stage 2: conv -> BN -> +residual -> ReLU
    a1p = jnp.pad(a1, ((0, 0), (1, 1), (1, 1), (0, 0)))
    y2, st2 = _conv3x3_stats(a1p, w2f, h, w, cout)
    sc2, sh2 = _bn_scale_shift(st2, g2, b2, n * h * w)
    out = _bn_act(y2, sc2, sh2, jnp.float32, residual=x)      # identity residual (Cin == Cout)

    return jnp.transpose(out, (0, 3, 1, 2))                   # NHWC -> NCHW


# --------------------------------------------------------------------------- reference
def residual_block_ref(x_nchw, w1, w2, g1, b1, g2, b2):
    """Pure-JAX reference mirroring the PyTorch forward (training-mode BN).

    Conv inputs are rounded to bf16 with f32 accumulation to mirror the kernel's native
    TPU MXU path; all other math is f32.
    """
    x = jnp.transpose(x_nchw, (0, 2, 3, 1))

    def conv(a, wgt):
        return jax.lax.conv_general_dilated(
            a.astype(jnp.bfloat16), wgt.astype(jnp.bfloat16),
            window_strides=(1, 1), padding=((1, 1), (1, 1)),
            dimension_numbers=("NHWC", "HWIO", "NHWC"),
            preferred_element_type=jnp.float32)

    def bn(y, g, b):
        mean = jnp.mean(y, axis=(0, 1, 2))
        var = jnp.mean(jnp.square(y - mean), axis=(0, 1, 2))
        return (y - mean) * jax.lax.rsqrt(var + EPS) * g + b

    a1 = jax.nn.relu(bn(conv(x, w1), g1, b1))
    out = bn(conv(a1, w2), g2, b2) + x
    out = jax.nn.relu(out)
    return jnp.transpose(out, (0, 3, 1, 2))


if __name__ == "__main__":
    key = jax.random.PRNGKey(0)
    kx, k1, k2, kg1, kb1, kg2, kb2 = jax.random.split(key, 7)

    N, C, H, W = 2, 8, 16, 16   # in_channels == out_channels so the identity residual is valid
    x = jax.random.normal(kx, (N, C, H, W), jnp.float32)

    fan_in = 9 * C
    # conv weights in HWIO (== torch (Cout,Cin,3,3) transposed to (3,3,Cin,Cout))
    w1 = jax.random.normal(k1, (3, 3, C, C), jnp.float32) / jnp.sqrt(fan_in)
    w2 = jax.random.normal(k2, (3, 3, C, C), jnp.float32) / jnp.sqrt(fan_in)
    g1 = 1.0 + 0.1 * jax.random.normal(kg1, (C,), jnp.float32)
    b1 = 0.1 * jax.random.normal(kb1, (C,), jnp.float32)
    g2 = 1.0 + 0.1 * jax.random.normal(kg2, (C,), jnp.float32)
    b2 = 0.1 * jax.random.normal(kb2, (C,), jnp.float32)

    out = jax.jit(residual_block_forward)(x, w1, w2, g1, b1, g2, b2)
    out = jax.block_until_ready(out)

    ref = residual_block_ref(x, w1, w2, g1, b1, g2, b2)
    assert out.shape == (N, C, H, W)
    err = float(jnp.max(jnp.abs(out - ref)))
    assert jnp.allclose(out, ref, rtol=1e-2, atol=1e-2), f"max abs err = {err}"
    print("KERNEL_OK")
</pallas_src>

<mosaic_0001>
module attributes {stable_mosaic.version = 11 : i64} {
  func.func @_conv3x3_stats_kernel(%arg0: i32, %arg1: memref<1x18x18x8xbf16, #tpu.memory_space<vmem>>, %arg2: memref<72x8xbf16, #tpu.memory_space<vmem>>, %arg3: memref<1x16x16x8xf32, #tpu.memory_space<vmem>>, %arg4: memref<1x2x8xf32, #tpu.memory_space<vmem>>) attributes {dimension_semantics = [#tpu.dimension_semantics<parallel>], iteration_bounds = array<i64: 2>, scalar_prefetch = 0 : i64, scratch_operands = 0 : i64, tpu.core_type = #tpu.core_type<tc>, window_params = [{transform_indices = @transform_0, window_bounds = array<i64: 1, 18, 18, 8>}, {pipeline_mode = #tpu.pipeline_mode<synchronous>, transform_indices = @transform_1, window_bounds = array<i64: 72, 8>}, {transform_indices = @transform_2, window_bounds = array<i64: 1, 16, 16, 8>}, {transform_indices = @transform_3, window_bounds = array<i64: 1, 2, 8>}]} {
    %c0 = arith.constant 0 : index
    %c0_0 = arith.constant 0 : index
    %c0_1 = arith.constant 0 : index
    %c0_2 = arith.constant 0 : index
    %0 = vector.load %arg1[%c0, %c0_0, %c0_1, %c0_2] : memref<1x18x18x8xbf16, #tpu.memory_space<vmem>>, vector<1x18x18x8xbf16>
    %1 = arith.extf %0 : vector<1x18x18x8xbf16> to vector<1x18x18x8xf32>
    %2 = vector.extract_strided_slice %1 {offsets = [0, 0, 0, 0], sizes = [1, 16, 16, 8], strides = [1, 1, 1, 1]} : vector<1x18x18x8xf32> to vector<1x16x16x8xf32>
    %3 = vector.shape_cast %2 : vector<1x16x16x8xf32> to vector<16x16x8xf32>
    %4 = vector.shape_cast %3 : vector<16x16x8xf32> to vector<256x8xf32>
    %5 = vector.extract_strided_slice %1 {offsets = [0, 0, 1, 0], sizes = [1, 16, 16, 8], strides = [1, 1, 1, 1]} : vector<1x18x18x8xf32> to vector<1x16x16x8xf32>
    %6 = vector.shape_cast %5 : vector<1x16x16x8xf32> to vector<16x16x8xf32>
    %7 = vector.shape_cast %6 : vector<16x16x8xf32> to vector<256x8xf32>
    %8 = vector.extract_strided_slice %1 {offsets = [0, 0, 2, 0], sizes = [1, 16, 16, 8], strides = [1, 1, 1, 1]} : vector<1x18x18x8xf32> to vector<1x16x16x8xf32>
    %9 = vector.shape_cast %8 : vector<1x16x16x8xf32> to vector<16x16x8xf32>
    %10 = vector.shape_cast %9 : vector<16x16x8xf32> to vector<256x8xf32>
    %11 = vector.extract_strided_slice %1 {offsets = [0, 1, 0, 0], sizes = [1, 16, 16, 8], strides = [1, 1, 1, 1]} : vector<1x18x18x8xf32> to vector<1x16x16x8xf32>
    %12 = vector.shape_cast %11 : vector<1x16x16x8xf32> to vector<16x16x8xf32>
    %13 = vector.shape_cast %12 : vector<16x16x8xf32> to vector<256x8xf32>
    %14 = vector.extract_strided_slice %1 {offsets = [0, 1, 1, 0], sizes = [1, 16, 16, 8], strides = [1, 1, 1, 1]} : vector<1x18x18x8xf32> to vector<1x16x16x8xf32>
    %15 = vector.shape_cast %14 : vector<1x16x16x8xf32> to vector<16x16x8xf32>
    %16 = vector.shape_cast %15 : vector<16x16x8xf32> to vector<256x8xf32>
    %17 = vector.extract_strided_slice %1 {offsets = [0, 1, 2, 0], sizes = [1, 16, 16, 8], strides = [1, 1, 1, 1]} : vector<1x18x18x8xf32> to vector<1x16x16x8xf32>
    %18 = vector.shape_cast %17 : vector<1x16x16x8xf32> to vector<16x16x8xf32>
    %19 = vector.shape_cast %18 : vector<16x16x8xf32> to vector<256x8xf32>
    %20 = vector.extract_strided_slice %1 {offsets = [0, 2, 0, 0], sizes = [1, 16, 16, 8], strides = [1, 1, 1, 1]} : vector<1x18x18x8xf32> to vector<1x16x16x8xf32>
    %21 = vector.shape_cast %20 : vector<1x16x16x8xf32> to vector<16x16x8xf32>
    %22 = vector.shape_cast %21 : vector<16x16x8xf32> to vector<256x8xf32>
    %23 = vector.extract_strided_slice %1 {offsets = [0, 2, 1, 0], sizes = [1, 16, 16, 8], strides = [1, 1, 1, 1]} : vector<1x18x18x8xf32> to vector<1x16x16x8xf32>
    %24 = vector.shape_cast %23 : vector<1x16x16x8xf32> to vector<16x16x8xf32>
    %25 = vector.shape_cast %24 : vector<16x16x8xf32> to vector<256x8xf32>
    %26 = vector.extract_strided_slice %1 {offsets = [0, 2, 2, 0], sizes = [1, 16, 16, 8], strides = [1, 1, 1, 1]} : vector<1x18x18x8xf32> to vector<1x16x16x8xf32>
    %27 = vector.shape_cast %26 : vector<1x16x16x8xf32> to vector<16x16x8xf32>
    %28 = vector.shape_cast %27 : vector<16x16x8xf32> to vector<256x8xf32>
    %29 = tpu.concatenate %4, %7, %10, %13, %16, %19, %22, %25, %28 in 1 : vector<256x8xf32>, vector<256x8xf32>, vector<256x8xf32>, vector<256x8xf32>, vector<256x8xf32>, vector<256x8xf32>, vector<256x8xf32>, vector<256x8xf32>, vector<256x8xf32> -> vector<256x72xf32>
    %30 = arith.truncf %29 : vector<256x72xf32> to vector<256x72xbf16>
    %c0_3 = arith.constant 0 : index
    %c0_4 = arith.constant 0 : index
    %31 = vector.load %arg2[%c0_3, %c0_4] : memref<72x8xbf16, #tpu.memory_space<vmem>>, vector<72x8xbf16>
    %cst = arith.constant dense<0.000000e+00> : vector<256x8xf32>
    %32 = tpu.matmul %30, %31, %cst {dimension_numbers = #tpu.dot_dimension_numbers<[1], [0], [0], [1], [0, 0, 1, 1], [], []>} : vector<256x72xbf16>, vector<72x8xbf16>, vector<256x8xf32> -> vector<256x8xf32>
    %33 = vector.shape_cast %32 : vector<256x8xf32> to vector<1x16x16x8xf32>
    %c0_5 = arith.constant 0 : index
    %c0_6 = arith.constant 0 : index
    %c0_7 = arith.constant 0 : index
    %c0_8 = arith.constant 0 : index
    %34 = vector.load %arg3[%c0_5, %c0_6, %c0_7, %c0_8] : memref<1x16x16x8xf32, #tpu.memory_space<vmem>>, vector<1x16x16x8xf32>
    tpu.vector_store %arg3[%c0_5, %c0_6, %c0_7, %c0_8], %33 {strides = array<i32>} : memref<1x16x16x8xf32, #tpu.memory_space<vmem>>, vector<1x16x16x8xf32>,
    %cst_9 = arith.constant dense<0.000000e+00> : vector<8xf32>
    %35 = vector.multi_reduction <add>, %32, %cst_9 [0] : vector<256x8xf32> to vector<8xf32>
    %36 = vector.shape_cast %35 : vector<8xf32> to vector<1x8xf32>
    %37 = arith.mulf %32, %32 : vector<256x8xf32>
    %cst_10 = arith.constant dense<0.000000e+00> : vector<8xf32>
    %38 = vector.multi_reduction <add>, %37, %cst_10 [0] : vector<256x8xf32> to vector<8xf32>
    %39 = vector.shape_cast %38 : vector<8xf32> to vector<1x8xf32>
    %40 = tpu.concatenate %36, %39 in 0 : vector<1x8xf32>, vector<1x8xf32> -> vector<2x8xf32>
    %41 = vector.shape_cast %40 : vector<2x8xf32> to vector<1x2x8xf32>
    %c0_11 = arith.constant 0 : index
    %c0_12 = arith.constant 0 : index
    %c0_13 = arith.constant 0 : index
    %42 = vector.load %arg4[%c0_11, %c0_12, %c0_13] : memref<1x2x8xf32, #tpu.memory_space<vmem>>, vector<1x2x8xf32>
    tpu.vector_store %arg4[%c0_11, %c0_12, %c0_13], %41 {strides = array<i32>} : memref<1x2x8xf32, #tpu.memory_space<vmem>>, vector<1x2x8xf32>,
    return
  }
  func.func @transform_0(%arg0: i32) -> (i32, i32, i32, i32) {
    %c0_i32 = arith.constant 0 : i32
    %c0_i32_0 = arith.constant 0 : i32
    %c0_i32_1 = arith.constant 0 : i32
    %c0_i32_2 = arith.constant 0 : i32
    return %arg0, %c0_i32, %c0_i32_0, %c0_i32_1 : i32, i32, i32, i32
  }
  func.func @transform_1(%arg0: i32) -> (i32, i32) {
    %c0_i32 = arith.constant 0 : i32
    %c0_i32_0 = arith.constant 0 : i32
    %c0_i32_1 = arith.constant 0 : i32
    return %c0_i32, %c0_i32_0 : i32, i32
  }
  func.func @transform_2(%arg0: i32) -> (i32, i32, i32, i32) {
    %c0_i32 = arith.constant 0 : i32
    %c0_i32_0 = arith.constant 0 : i32
    %c0_i32_1 = arith.constant 0 : i32
    %c0_i32_2 = arith.constant 0 : i32
    return %arg0, %c0_i32, %c0_i32_0, %c0_i32_1 : i32, i32, i32, i32
  }
  func.func @transform_3(%arg0: i32) -> (i32, i32, i32) {
    %c0_i32 = arith.constant 0 : i32
    %c0_i32_0 = arith.constant 0 : i32
    %c0_i32_1 = arith.constant 0 : i32
    return %arg0, %c0_i32, %c0_i32_0 : i32, i32, i32
  }
}

module attributes {stable_mosaic.version = 11 : i64} {
  func.func @_bn_relu_kernel(%arg0: i32, %arg1: memref<1x16x128xf32, #tpu.memory_space<vmem>>, %arg2: memref<1x1x128xf32, #tpu.memory_space<vmem>>, %arg3: memref<1x1x128xf32, #tpu.memory_space<vmem>>, %arg4: memref<1x16x128xbf16, #tpu.memory_space<vmem>>) attributes {dimension_semantics = [#tpu.dimension_semantics<parallel>], iteration_bounds = array<i64: 2>, scalar_prefetch = 0 : i64, scratch_operands = 0 : i64, tpu.core_type = #tpu.core_type<tc>, window_params = [{transform_indices = @transform_0, window_bounds = array<i64: 1, 16, 128>}, {pipeline_mode = #tpu.pipeline_mode<synchronous>, transform_indices = @transform_1, window_bounds = array<i64: 1, 1, 128>}, {pipeline_mode = #tpu.pipeline_mode<synchronous>, transform_indices = @transform_2, window_bounds = array<i64: 1, 1, 128>}, {transform_indices = @transform_3, window_bounds = array<i64: 1, 16, 128>}]} {
    %c0 = arith.constant 0 : index
    %c0_0 = arith.constant 0 : index
    %c0_1 = arith.constant 0 : index
    %0 = vector.load %arg1[%c0, %c0_0, %c0_1] : memref<1x16x128xf32, #tpu.memory_space<vmem>>, vector<1x16x128xf32>
    %c0_2 = arith.constant 0 : index
    %c0_3 = arith.constant 0 : index
    %c0_4 = arith.constant 0 : index
    %1 = vector.load %arg2[%c0_2, %c0_3, %c0_4] : memref<1x1x128xf32, #tpu.memory_space<vmem>>, vector<1x1x128xf32>
    %2 = vector.broadcast %1 : vector<1x1x128xf32> to vector<1x16x128xf32>
    %3 = arith.mulf %0, %2 : vector<1x16x128xf32>
    %c0_5 = arith.constant 0 : index
    %c0_6 = arith.constant 0 : index
    %c0_7 = arith.constant 0 : index
    %4 = vector.load %arg3[%c0_5, %c0_6, %c0_7] : memref<1x1x128xf32, #tpu.memory_space<vmem>>, vector<1x1x128xf32>
    %5 = vector.broadcast %4 : vector<1x1x128xf32> to vector<1x16x128xf32>
    %6 = arith.addf %3, %5 : vector<1x16x128xf32>
    %cst = arith.constant 0.000000e+00 : f32
    %7 = vector.broadcast %cst : f32 to vector<1x16x128xf32>
    %8 = arith.maximumf %6, %7 : vector<1x16x128xf32>
    %9 = arith.truncf %8 : vector<1x16x128xf32> to vector<1x16x128xbf16>
    %c0_8 = arith.constant 0 : index
    %c0_9 = arith.constant 0 : index
    %c0_10 = arith.constant 0 : index
    %10 = vector.load %arg4[%c0_8, %c0_9, %c0_10] : memref<1x16x128xbf16, #tpu.memory_space<vmem>>, vector<1x16x128xbf16>
    tpu.vector_store %arg4[%c0_8, %c0_9, %c0_10], %9 {strides = array<i32>} : memref<1x16x128xbf16, #tpu.memory_space<vmem>>, vector<1x16x128xbf16>,
    return
  }
  func.func @transform_0(%arg0: i32) -> (i32, i32, i32) {
    %c0_i32 = arith.constant 0 : i32
    %c0_i32_0 = arith.constant 0 : i32
    %c0_i32_1 = arith.constant 0 : i32
    return %arg0, %c0_i32, %c0_i32_0 : i32, i32, i32
  }
  func.func @transform_1(%arg0: i32) -> (i32, i32, i32) {
    %c0_i32 = arith.constant 0 : i32
    %c0_i32_0 = arith.constant 0 : i32
    %c0_i32_1 = arith.constant 0 : i32
    %c0_i32_2 = arith.constant 0 : i32
    return %c0_i32, %c0_i32_0, %c0_i32_1 : i32, i32, i32
  }
  func.func @transform_2(%arg0: i32) -> (i32, i32, i32) {
    %c0_i32 = arith.constant 0 : i32
    %c0_i32_0 = arith.constant 0 : i32
    %c0_i32_1 = arith.constant 0 : i32
    %c0_i32_2 = arith.constant 0 : i32
    return %c0_i32, %c0_i32_0, %c0_i32_1 : i32, i32, i32
  }
  func.func @transform_3(%arg0: i32) -> (i32, i32, i32) {
    %c0_i32 = arith.constant 0 : i32
    %c0_i32_0 = arith.constant 0 : i32
    %c0_i32_1 = arith.constant 0 : i32
    return %arg0, %c0_i32, %c0_i32_0 : i32, i32, i32
  }
}

module attributes {stable_mosaic.version = 11 : i64} {
  func.func @_bn_add_relu_kernel(%arg0: i32, %arg1: memref<1x16x128xf32, #tpu.memory_space<vmem>>, %arg2: memref<1x1x128xf32, #tpu.memory_space<vmem>>, %arg3: memref<1x1x128xf32, #tpu.memory_space<vmem>>, %arg4: memref<1x16x128xf32, #tpu.memory_space<vmem>>, %arg5: memref<1x16x128xf32, #tpu.memory_space<vmem>>) attributes {dimension_semantics = [#tpu.dimension_semantics<parallel>], iteration_bounds = array<i64: 2>, scalar_prefetch = 0 : i64, scratch_operands = 0 : i64, tpu.core_type = #tpu.core_type<tc>, window_params = [{transform_indices = @transform_0, window_bounds = array<i64: 1, 16, 128>}, {pipeline_mode = #tpu.pipeline_mode<synchronous>, transform_indices = @transform_1, window_bounds = array<i64: 1, 1, 128>}, {pipeline_mode = #tpu.pipeline_mode<synchronous>, transform_indices = @transform_2, window_bounds = array<i64: 1, 1, 128>}, {transform_indices = @transform_3, window_bounds = array<i64: 1, 16, 128>}, {transform_indices = @transform_4, window_bounds = array<i64: 1, 16, 128>}]} {
    %c0 = arith.constant 0 : index
    %c0_0 = arith.constant 0 : index
    %c0_1 = arith.constant 0 : index
    %0 = vector.load %arg1[%c0, %c0_0, %c0_1] : memref<1x16x128xf32, #tpu.memory_space<vmem>>, vector<1x16x128xf32>
    %c0_2 = arith.constant 0 : index
    %c0_3 = arith.constant 0 : index
    %c0_4 = arith.constant 0 : index
    %1 = vector.load %arg2[%c0_2, %c0_3, %c0_4] : memref<1x1x128xf32, #tpu.memory_space<vmem>>, vector<1x1x128xf32>
    %2 = vector.broadcast %1 : vector<1x1x128xf32> to vector<1x16x128xf32>
    %3 = arith.mulf %0, %2 : vector<1x16x128xf32>
    %c0_5 = arith.constant 0 : index
    %c0_6 = arith.constant 0 : index
    %c0_7 = arith.constant 0 : index
    %4 = vector.load %arg3[%c0_5, %c0_6, %c0_7] : memref<1x1x128xf32, #tpu.memory_space<vmem>>, vector<1x1x128xf32>
    %5 = vector.broadcast %4 : vector<1x1x128xf32> to vector<1x16x128xf32>
    %6 = arith.addf %3, %5 : vector<1x16x128xf32>
    %c0_8 = arith.constant 0 : index
    %c0_9 = arith.constant 0 : index
    %c0_10 = arith.constant 0 : index
    %7 = vector.load %arg4[%c0_8, %c0_9, %c0_10] : memref<1x16x128xf32, #tpu.memory_space<vmem>>, vector<1x16x128xf32>
    %8 = arith.addf %6, %7 : vector<1x16x128xf32>
    %cst = arith.constant 0.000000e+00 : f32
    %9 = vector.broadcast %cst : f32 to vector<1x16x128xf32>
    %10 = arith.maximumf %8, %9 : vector<1x16x128xf32>
    %c0_11 = arith.constant 0 : index
    %c0_12 = arith.constant 0 : index
    %c0_13 = arith.constant 0 : index
    %11 = vector.load %arg5[%c0_11, %c0_12, %c0_13] : memref<1x16x128xf32, #tpu.memory_space<vmem>>, vector<1x16x128xf32>
    tpu.vector_store %arg5[%c0_11, %c0_12, %c0_13], %10 {strides = array<i32>} : memref<1x16x128xf32, #tpu.memory_space<vmem>>, vector<1x16x128xf32>,
    return
  }
  func.func @transform_0(%arg0: i32) -> (i32, i32, i32) {
    %c0_i32 = arith.constant 0 : i32
    %c0_i32_0 = arith.constant 0 : i32
    %c0_i32_1 = arith.constant 0 : i32
    return %arg0, %c0_i32, %c0_i32_0 : i32, i32, i32
  }
  func.func @transform_1(%arg0: i32) -> (i32, i32, i32) {
    %c0_i32 = arith.constant 0 : i32
    %c0_i32_0 = arith.constant 0 : i32
    %c0_i32_1 = arith.constant 0 : i32
    %c0_i32_2 = arith.constant 0 : i32
    return %c0_i32, %c0_i32_0, %c0_i32_1 : i32, i32, i32
  }
  func.func @transform_2(%arg0: i32) -> (i32, i32, i32) {
    %c0_i32 = arith.constant 0 : i32
    %c0_i32_0 = arith.constant 0 : i32
    %c0_i32_1 = arith.constant 0 : i32
    %c0_i32_2 = arith.constant 0 : i32
    return %c0_i32, %c0_i32_0, %c0_i32_1 : i32, i32, i32
  }
  func.func @transform_3(%arg0: i32) -> (i32, i32, i32) {
    %c0_i32 = arith.constant 0 : i32
    %c0_i32_0 = arith.constant 0 : i32
    %c0_i32_1 = arith.constant 0 : i32
    return %arg0, %c0_i32, %c0_i32_0 : i32, i32, i32
  }
  func.func @transform_4(%arg0: i32) -> (i32, i32, i32) {
    %c0_i32 = arith.constant 0 : i32
    %c0_i32_0 = arith.constant 0 : i32
    %c0_i32_1 = arith.constant 0 : i32
    return %arg0, %c0_i32, %c0_i32_0 : i32, i32, i32
  }
}

</mosaic_0001>

<bundles_post_ra>
// kernel: tile.23
= control target key start
LH: loop header
LB: loop body
LE: loop exit
PB: predicated region body
PF: predicated region fallthrough
CT: control target
= control target key end

     0   :  { %s28_s0 = inlined_call_operand.vmem [shape: f32[8], index: 0, kind: input, shape index: {}]   ;;  %s29_s1 = inlined_call_operand.vmem [shape: f32[16,8], index: 1, kind: output, shape index: {}]  }
   0x1   :  { %v4_v0 = vld [vmem:[%s28_s0] ss:$0 sm:$0xff] }
   0x2   :  { %5 = vst [vmem:[%s29_s1] sm:$0xff] %v4_v0  ;;  %8 = vst [vmem:[%s29_s1 + $0x8] sm:$0xff] %v4_v0 }

// kernel: tile.24
= control target key start
LH: loop header
LB: loop body
LE: loop exit
PB: predicated region body
PF: predicated region fallthrough
CT: control target
= control target key end

     0   :  { %s131_s10 = smov 120   ;;  %s132_s11 = smov 104   ;;  %vm3_vm0 = vcmask 64512   ;;  %vm9_vm1 = vcmask 1048512   ;;  %vm15_vm2 = vcmask 982912   ;;  %vm21_vm3 = vcmask 917312   ;;  %s207_s0 = inlined_call_operand.vmem [shape: f32[16,8], index: 0, kind: input, shape index: {}]   ;;  %s208_s1 = inlined_call_operand.vmem [shape: f32[1,1,128], index: 1, kind: output, shape index: {}]  }
   0x1   :  { %v101_v0 = vld [vmem:[%s207_s0 + $0xf] sm:$0x1]   ;;  %v103_v1 = vld [vmem:[%s207_s0 + $0xd] sm:$0x1]   ;;  %v102_v2 = vld [vmem:[%s207_s0 + $0xe] sm:$0x1]  }
   0x2   :  { %7 = vrot.lane.b32.xlu0 %v101_v0, %s131_s10  ;;  %19 = vrot.lane.b32.xlu1 %v103_v1, %s132_s11  ;;  %v104_v3 = vld [vmem:[%s207_s0 + $0xc] sm:$0x1]   ;;  %s133_s16 = smov 112   ;;  %s134_s17 = smov 96   ;;  %v105_v4 = vld [vmem:[%s207_s0 + $0xb] sm:$0x1]  }
   0x3   :  { %v106_v5 = vld [vmem:[%s207_s0 + $0xa] sm:$0x1]   ;;  %v2_v6 = vld [vmem:[%s207_s0] sm:$0x1]   ;;  %s135_s24 = smov 88   ;;  %s136_s25 = smov 80  }
   0x4   :  { %4 = vst.msk [vmem:[#allocation0] sm:$0x1] %vm3_vm0, %v2_v6   ;;  %v107_v7 = vld [vmem:[%s207_s0 + $0x9] sm:$0x1]   ;;  %v108_v8 = vld [vmem:[%s207_s0 + $0x8] sm:$0x1]  }
   0x5   :  { %s137_s30 = smov 72   ;;  %s138_s2 = smov 64   ;;  %v109_v9 = vld [vmem:[%s207_s0 + $0x7] sm:$0x1]   ;;  %v110_v10 = vld [vmem:[%s207_s0 + $0x6] sm:$0x1]  }
   0x6   :  { %13 = vrot.lane.b32.xlu0 %v102_v2, %s133_s16  ;;  %25 = vrot.lane.b32.xlu1 %v104_v3, %s134_s17  ;;  %s139_s7 = smov 56   ;;  %s140_s8 = smov 48   ;;  %v111_v11 = vld [vmem:[%s207_s0 + $0x5] sm:$0x1]   ;;  %v112_v12 = vld [vmem:[%s207_s0 + $0x4] sm:$0x1]  }
   0x7   :  { %s141_s13 = smov 40   ;;  %s142_s14 = smov 32   ;;  %v113_v13 = vld [vmem:[%s207_s0 + $0x3] sm:$0x1]   ;;  %v114_v14 = vld [vmem:[%s207_s0 + $0x2] sm:$0x1]  }
   0x8   :  { %s143_s19 = smov 24   ;;  %s144_s20 = smov 16   ;;  %v115_v15 = vld [vmem:[%s207_s0 + $0x1] sm:$0x1]   ;;  %vm27_vm4 = vcmask 851712   ;;  %vm33_vm5 = vcmask 786112  }
   0x9   :  { %s145_s0 = smov 8   ;;  %vm39_vm6 = vcmask 720512   ;;  %vm45_vm7 = vcmask 654912   ;;  %vm51_vm8 = vcmask 589312   ;;  %vm57_vm9 = vcmask 523712  }
   0xa   :  { %31 = vrot.lane.b32.xlu0 %v105_v4, %s135_s24  ;;  %37 = vrot.lane.b32.xlu1 %v106_v5, %s136_s25  ;;  %vm63_vm10 = vcmask 458112   ;;  %vm69_vm11 = vcmask 392512   ;;  %vm75_vm12 = vcmask 326912   ;;  %vm81_vm13 = vcmask 261312  }
   0xb   :  { %vm87_vm14 = vcmask 195712   ;;  %vm93_vm15 = vcmask 130112  }
   0xe   :  { %43 = vrot.lane.b32.xlu0 %v107_v7, %s137_s30  ;;  %49 = vrot.lane.b32.xlu1 %v108_v8, %s138_s2 }
  0x12   :  { %55 = vrot.lane.b32.xlu0 %v109_v9, %s139_s7  ;;  %61 = vrot.lane.b32.xlu1 %v110_v10, %s140_s8 }
  0x16   :  { %67 = vrot.lane.b32.xlu0 %v111_v11, %s141_s13  ;;  %73 = vrot.lane.b32.xlu1 %v112_v12, %s142_s14 }
  0x1a   :  { %79 = vrot.lane.b32.xlu0 %v113_v13, %s143_s19  ;;  %85 = vrot.lane.b32.xlu1 %v114_v14, %s144_s20 }
  0x1e   :  { %91 = vrot.lane.b32.xlu0 %v115_v15, %s145_s0 }
  0x74   :  { %v8_v16 = vpop.permute.xlu0 %7   ;;  %v20_v17 = vpop.permute.xlu1 %19  }
  0x75   :  { %10 = vst.msk [vmem:[#allocation0] sm:$0x1] %vm9_vm1, %v8_v16  }
  0x78   :  { %v14_v18 = vpop.permute.xlu0 %13   ;;  %v26_v19 = vpop.permute.xlu1 %25  }
  0x79   :  { %16 = vst.msk [vmem:[#allocation0] sm:$0x1] %vm15_vm2, %v14_v18  }
  0x7a   :  { %22 = vst.msk [vmem:[#allocation0] sm:$0x1] %vm21_vm3, %v20_v17  }
  0x7b   :  { %28 = vst.msk [vmem:[#allocation0] sm:$0x1] %vm27_vm4, %v26_v19  }
  0x7c   :  { %v32_v20 = vpop.permute.xlu0 %31   ;;  %v38_v21 = vpop.permute.xlu1 %37  }
  0x7d   :  { %34 = vst.msk [vmem:[#allocation0] sm:$0x1] %vm33_vm5, %v32_v20  }
  0x7e   :  { %40 = vst.msk [vmem:[#allocation0] sm:$0x1] %vm39_vm6, %v38_v21  }
  0x80   :  { %v44_v22 = vpop.permute.xlu0 %43   ;;  %v50_v23 = vpop.permute.xlu1 %49  }
  0x81   :  { %46 = vst.msk [vmem:[#allocation0] sm:$0x1] %vm45_vm7, %v44_v22  }
  0x82   :  { %52 = vst.msk [vmem:[#allocation0] sm:$0x1] %vm51_vm8, %v50_v23  }
  0x84   :  { %v56_v24 = vpop.permute.xlu0 %55   ;;  %v62_v25 = vpop.permute.xlu1 %61  }
  0x85   :  { %58 = vst.msk [vmem:[#allocation0] sm:$0x1] %vm57_vm9, %v56_v24  }
  0x86   :  { %64 = vst.msk [vmem:[#allocation0] sm:$0x1] %vm63_vm10, %v62_v25  }
  0x88   :  { %v68_v26 = vpop.permute.xlu0 %67   ;;  %v74_v27 = vpop.permute.xlu1 %73  }
  0x89   :  { %70 = vst.msk [vmem:[#allocation0] sm:$0x1] %vm69_vm11, %v68_v26  }
  0x8a   :  { %76 = vst.msk [vmem:[#allocation0] sm:$0x1] %vm75_vm12, %v74_v27  }
  0x8c   :  { %v80_v28 = vpop.permute.xlu0 %79   ;;  %v86_v29 = vpop.permute.xlu1 %85  }
  0x8d   :  { %82 = vst.msk [vmem:[#allocation0] sm:$0x1] %vm81_vm13, %v80_v28  }
  0x8e   :  { %88 = vst.msk [vmem:[#allocation0] sm:$0x1] %vm87_vm14, %v86_v29  }
  0x90   :  { %v92_v30 = vpop.permute.xlu0 %91  }
  0x91   :  { %94 = vst.msk [vmem:[#allocation0] sm:$0x1] %vm93_vm15, %v92_v30  }
  0x98   :  { %v98_v31 = vld [vmem:[#allocation0] sm:$0x1] }
  0x99   :  { %100 = vst [vmem:[%s208_s1] sm:$0x1] %v98_v31 }

// kernel: residual_block_forward.5
= control target key start
LH: loop header
LB: loop body
LE: loop exit
PB: predicated region body
PF: predicated region fallthrough
CT: control target
= control target key end

     0   :  { %s318_s12 = smov 0   ;;  %s335_s0 = inlined_call_operand.vmem [shape: f32[2,16,128], index: 0, kind: input, shape index: {}]   ;;  %s336_s1 = inlined_call_operand.vmem [shape: f32[1,1,128], index: 1, kind: input, shape index: {}]   ;;  %s337_s2 = inlined_call_operand.vmem [shape: f32[1,1,128], index: 2, kind: input, shape index: {}]   ;;  %s338_s3 = inlined_call_operand.vmem [shape: bf16[2,16,128], index: 3, kind: output, shape index: {}]  }
   0x1 LB: > { %s258_s13 = sadd.s32 4294967295, %s296_s12   ;;  %p262_p0 = scmp.ge.s32.totalorder %s296_s12, 1  ;;  %s296_s12 = sphi %s318_s12, %s13_s12  }
   0x2   : > { %p137_p1 = scmp.lt.s32.totalorder %s296_s12, 3 }
   0x4   : > { %p138_p2 = pnand %p262_p0, %p137_p1 }
   0x5   : > { %p161_p3 = scmp.lt.s32.totalorder (!%p138_p2), %s258_s13, 1  ;;  %v267_v0 = vld [vmem:[%s336_s1] ss:$0 sm:$0xff] (!%p138_p2) }
   0x6   : > { %141 = sbr.rel (%p138_p2) target bundleno = 26 (0x1a), region = 32  ;;  %v268_v3 = vld [vmem:[%s337_s2] ss:$0 sm:$0xff] (!%p138_p2) }
   0xd   : > { %s340_s13 = smov (!%p161_p3, %s258_s13), 1 }
   0xe   : > { %s273_s14 = sshll.u32 %s340_s13, 4  ;;  %s274_s22 = sshll.u32 %s340_s13, 3 }
   0xf   : > { %s165_s19 = scalar_lea.vmem %s335_s0, %s273_s14  ;;  %s170_s25 = scalar_lea.vmem %s338_s3, %s274_s22 }
  0x10   : > { %v171_v1 = vld [vmem:[%s165_s19] sm:$0xff]  ;;  %v172_v2 = vld [vmem:[%s165_s19 + $0x8] sm:$0xff] }
  0x11   : > { %v180_v4 = vmul.f32 %v267_v0, %v171_v1  ;;  %v181_v5 = vmul.f32 %v267_v0, %v172_v2 }
  0x13   : > { %v189_v6 = vadd.f32 %v268_v3, %v180_v4  ;;  %v190_v7 = vadd.f32 %v268_v3, %v181_v5 }
  0x15   : > { %v191_v8 = vmax.f32 %v189_v6, 0.0  ;;  %v192_v9 = vmax.f32 %v190_v7, 0.0 }
  0x17   : > { %v280_v10 = vpack.c.bf16 %v192_v9, %v191_v8 }
  0x19   : > { %281 = vst [vmem:[%s170_s25] sm:$0xff] %v280_v10  }
  0x1a PF: > { %s13_s12 = sadd.s32 1, %s296_s12  }
  0x1b   : > { %p10_p4 = scmp.ge.s32.totalorder %s13_s12, 4  }
  0x1d   :  { %12 = sbr.rel (!%p10_p4) target bundleno = 1 (0x1), region = 62 }

// kernel: residual_block_forward.7
= control target key start
LH: loop header
LB: loop body
LE: loop exit
PB: predicated region body
PF: predicated region fallthrough
CT: control target
= control target key end

     0   :  { %s372_s15 = smov 0   ;;  %s398_s0 = inlined_call_operand.vmem [shape: f32[2,16,128], index: 0, kind: input, shape index: {}]   ;;  %s399_s1 = inlined_call_operand.vmem [shape: f32[1,1,128], index: 1, kind: input, shape index: {}]   ;;  %s400_s2 = inlined_call_operand.vmem [shape: f32[1,1,128], index: 2, kind: input, shape index: {}]   ;;  %s401_s3 = inlined_call_operand.vmem [shape: f32[2,16,128], index: 3, kind: input, shape index: {}]   ;;  %s402_s4 = inlined_call_operand.vmem [shape: f32[2,16,128], index: 4, kind: output, shape index: {}]  }
   0x1 LB: > { %s313_s16 = sadd.s32 4294967295, %s345_s15   ;;  %p317_p0 = scmp.ge.s32.totalorder %s345_s15, 1  ;;  %s345_s15 = sphi %s372_s15, %s14_s15  }
   0x2   : > { %p172_p1 = scmp.lt.s32.totalorder %s345_s15, 3 }
   0x4   : > { %p173_p2 = pnand %p317_p0, %p172_p1 }
   0x5   : > { %p203_p3 = scmp.lt.s32.totalorder (!%p173_p2), %s313_s16, 1  ;;  %v324_v0 = vld [vmem:[%s399_s1] ss:$0 sm:$0xff] (!%p173_p2) }
   0x6   : > { %176 = sbr.rel (%p173_p2) target bundleno = 26 (0x1a), region = 36  ;;  %v325_v3 = vld [vmem:[%s400_s2] ss:$0 sm:$0xff] (!%p173_p2) }
   0xd   : > { %s404_s16 = smov (!%p203_p3, %s313_s16), 1 }
   0xe   : > { %s328_s17 = sshll.u32 %s404_s16, 4 }
   0xf   : > { %s207_s22 = scalar_lea.vmem %s398_s0, %s328_s17  ;;  %s212_s25 = scalar_lea.vmem %s401_s3, %s328_s17 }
  0x10   : > { %v218_v1 = vld [vmem:[%s207_s22] sm:$0xff]  ;;  %v219_v2 = vld [vmem:[%s207_s22 + $0x8] sm:$0xff]  ;;  %s217_s30 = scalar_lea.vmem %s402_s4, %s328_s17 }
  0x11   : > { %v227_v4 = vmul.f32 %v324_v0, %v218_v1  ;;  %v228_v5 = vmul.f32 %v324_v0, %v219_v2  ;;  %v238_v6 = vld [vmem:[%s212_s25] sm:$0xff]  ;;  %v239_v7 = vld [vmem:[%s212_s25 + $0x8] sm:$0xff] }
  0x13   : > { %v236_v8 = vadd.f32 %v325_v3, %v227_v4  ;;  %v237_v9 = vadd.f32 %v325_v3, %v228_v5 }
  0x15   : > { %v240_v10 = vadd.f32 %v238_v6, %v236_v8  ;;  %v241_v11 = vadd.f32 %v239_v7, %v237_v9 }
  0x17   : > { %v242_v12 = vmax.f32 %v240_v10, 0.0  ;;  %v243_v13 = vmax.f32 %v241_v11, 0.0 }
  0x19   : > { %244 = vst [vmem:[%s217_s30] sm:$0xff] %v242_v12  ;;  %245 = vst [vmem:[%s217_s30 + $0x8] sm:$0xff] %v243_v13 }
  0x1a PF: > { %s14_s15 = sadd.s32 1, %s345_s15  }
  0x1b   : > { %p11_p4 = scmp.ge.s32.totalorder %s14_s15, 4  }
  0x1d   :  { %13 = sbr.rel (!%p11_p4) target bundleno = 1 (0x1), region = 69 }

// kernel: residual_block_forward.4
= control target key start
LH: loop header
LB: loop body
LE: loop exit
PB: predicated region body
PF: predicated region fallthrough
CT: control target
= control target key end

     0   :  { %s2967_s12 = smov 0   ;;  %s4365_s0 = inlined_call_operand.vmem [shape: bf16[2,18,18,8], index: 0, kind: input, shape index: {}]   ;;  %s4366_s1 = inlined_call_operand.vmem [shape: bf16[72,8], index: 1, kind: input, shape index: {}]   ;;  %s4367_s2 = inlined_call_operand.vmem [shape: f32[2,16,16,8], index: 2, kind: output, shape index: {0}]   ;;  %s4368_s3 = inlined_call_operand.vmem [shape: f32[2,2,8], index: 3, kind: output, shape index: {1}]  }
   0x1 LB: > { %s2117_s13 = sadd.s32 4294967295, %s2937_s12   ;;  %p2121_p0 = scmp.ge.s32.totalorder %s2937_s12, 1  ;;  %s2937_s12 = sphi %s2967_s12, %s14_s12  }
   0x2   : > { %p140_p1 = scmp.lt.s32.totalorder %s2937_s12, 3 }
   0x4   : > { %p141_p2 = pnand %p2121_p0, %p140_p1 }
   0x6   : > { %144 = sbr.rel (%p141_p2) target bundleno = 643 (0x283), region = 28 }
   0xd   : > { %p168_p3 = scmp.lt.s32.totalorder %s2117_s13, 1  ;;  %vm339_vm0 = vcmask 1046528   ;;  %s2939_s18 = smov 8   ;;  %vm420_vm1 = vcmask 1045504   ;;  %vm1660_vm2 = vcmask 1043456   ;;  %vm1295_vm3 = vcmask 64512  }
   0xe   : > { %s2940_s19 = smov 16   ;;  %s2941_s20 = smov 24   ;;  %vm1328_vm4 = vcmask 130048   ;;  %vm1361_vm5 = vcmask 195584   ;;  %vm1394_vm6 = vcmask 261120   ;;  %vm1427_vm7 = vcmask 326656  }
   0xf   : > { %s4570_s13 = smov (!%p168_p3, %s2117_s13), 1  ;;  %s2942_s25 = smov 32   ;;  %vm1460_vm8 = vcmask 392192   ;;  %vm1493_vm9 = vcmask 457728   ;;  %vm1526_vm10 = vcmask 523264   ;;  %vm1611_vm11 = vcmask 588800  }
  0x10   : > { %s2269_s14 = smul.u32 216, %s4570_s13  ;;  %s2943_s28 = smov 40   ;;  %vm2027_vm12 = vcmask 1040384   ;;  %vm2029_vm13 = vcmask 58368  }
  0x11   : > { %s2944_s4 = smov 48   ;;  %s2945_s7 = smov 56  }
  0x12   : > { %s2981_s17 = scalar_lea.vmem %s4365_s0, %s2269_s14  ;;  %s2946_s8 = smov 64  }
  0x13   : > { %v2186_v0 = vld [vmem:[%s2981_s17 + $0x18] sm:$0xff]   ;;  %v2985_v1 = vld [vmem:[%s2981_s17 + $0x20] sm:$0x1]  ;;  %v2996_v7 = vld [vmem:[%s2981_s17 + $0x8] sm:$0x1]  ;;  %s2149_s9 = sshll.u32 %s4570_s13, 8 }
  0x14   : > { %v2151_v2 = vld [vmem:[%s2981_s17] sm:$0xff]   ;;  %v2988_v3 = vunpack.c.l.bf16 %v2186_v0  ;;  %v2990_v4 = vunpack.c.h.bf16 %v2186_v0  ;;  %v4375_v5 = vunpack.c.l.bf16 %v2985_v1  ;;  %v3000_v9 = vld [vmem:[%s2981_s17 + $0x2c] sm:$0x1]  ;;  %v4378_v11 = vunpack.c.l.bf16 %v2996_v7  ;;  %v3021_v23 = vld [vmem:[%s2981_s17 + $0x14] sm:$0x1]  ;;  %s4228_s14 = scalar_lea.vmem %s4367_s2, %s2149_s9  ;;  %s2125_s15 = sshll.u32 %s4570_s13, 1 }
  0x15   : > { %v2993_v6 = vunpack.c.l.bf16 %v2151_v2  ;;  %v192_v8 = vld [vmem:[%s2981_s17 + $0x24] sm:$0xff]   ;;  %v3002_v10 = vunpack.c.h.bf16 %v2151_v2  ;;  %v186_v14 = vld [vmem:[%s2981_s17 + $0xc] sm:$0xff]   ;;  %v4377_v21 = vunpack.c.l.bf16 %v3000_v9  ;;  %v198_v28 = vld [vmem:[%s2981_s17 + $0x3c] sm:$0xff]   ;;  %v4379_v37 = vunpack.c.l.bf16 %v3021_v23 }
  0x16   : > { %v3005_v12 = vunpack.c.l.bf16 %v192_v8  ;;  %v3007_v13 = vunpack.c.h.bf16 %v192_v8  ;;  %v350_v15 = vrot.slane %v2988_v3, 1  ;;  %v351_v16 = vrot.slane %v2990_v4, 1  ;;  %v3036_v33 = vld [vmem:[%s2981_s17 + $0x44] sm:$0x1]  ;;  %v2187_v38 = vld [vmem:[%s2981_s17 + $0x30] sm:$0xff]   ;;  %v2188_v58 = vld [vmem:[%s2981_s17 + $0x48] sm:$0xff]  }
  0x17   : > { %v353_v17 = vrot.slane %v4375_v5, 1  ;;  %v340_v18 = vrot.slane %v2993_v6, 1  ;;  %v341_v19 = vrot.slane %v3002_v10, 1  ;;  %v343_v20 = vrot.slane %v4378_v11, 1  ;;  %v3052_v43 = vld [vmem:[%s2981_s17 + $0x38] sm:$0x1] }
  0x18   : > { %v355_v22 = vrot.slane %v3005_v12, 1  ;;  %v352_v24 = vsel %vm339_vm0, %v350_v15, %v351_v16  ;;  %v356_v26 = vrot.slane %v3007_v13, 1  ;;  %v3026_v27 = vunpack.c.l.bf16 %v186_v14  ;;  %v204_v52 = vld [vmem:[%s2981_s17 + $0x54] sm:$0xff]   ;;  %v3074_v57 = vld [vmem:[%s2981_s17 + $0x5c] sm:$0x1] }
  0x19   : > { %v354_v25 = vsel %vm339_vm0, %v351_v16, %v353_v17  ;;  %v342_v30 = vsel %vm339_vm0, %v340_v18, %v341_v19  ;;  %v344_v31 = vsel %vm339_vm0, %v341_v19, %v343_v20  ;;  %v358_v32 = vrot.slane %v4377_v21, 1  ;;  %v210_v19 = vld [vmem:[%s2981_s17 + $0x6c] sm:$0xff]   ;;  %v3203_v5 = vld [vmem:[%s2981_s17 + $0x98] sm:$0x1] }
  0x1a   : > { %4447 = vst [vmem:[#allocation2_spill] sm:$0xff] %v3026_v27  ;;  %v3029_v29 = vpack.i.bf16 %v354_v25, %v352_v24  ;;  %v2286_v34 = vpack.i.bf16 %v344_v31, %v342_v30  ;;  %v357_v35 = vsel %vm339_vm0, %v355_v22, %v356_v26  ;;  %v3039_v36 = vunpack.c.h.bf16 %v186_v14  ;;  %v3092_v14 = vld [vmem:[%s2981_s17 + $0x50] sm:$0x1]  ;;  %v228_v21 = vld [vmem:[%s2981_s17 + $0xb4] sm:$0xff]  }
  0x1b   : > { %v359_v39 = vsel %vm339_vm0, %v356_v26, %v358_v32  ;;  %v345_v40 = vrot.slane %v3026_v27, 1  ;;  %v3047_v41 = vunpack.c.l.bf16 %v198_v28  ;;  %v3049_v42 = vunpack.c.h.bf16 %v198_v28  ;;  %v3109_v26 = vld [vmem:[%s2981_s17 + $0x74] sm:$0x1]  ;;  %v2189_v28 = vld [vmem:[%s2981_s17 + $0x60] sm:$0xff]  }
  0x1c   : > { %4448 = vst [vmem:[#allocation3_spill] sm:$0xff] %v3029_v29  ;;  %4449 = vst [vmem:[#allocation4_spill] sm:$0xff] %v3039_v36  ;;  %2297 = vrot.lane.b32.xlu1 %v3029_v29, %s2939_s18  ;;  %2287 = vrot.lane.b32.xlu0 %v2286_v34, %s2939_s18  ;;  %v3055_v44 = vpack.i.bf16 %v359_v39, %v357_v35  ;;  %v346_v45 = vrot.slane %v3039_v36, 1  ;;  %v348_v46 = vrot.slane %v4379_v37, 1  ;;  %v4374_v47 = vunpack.c.l.bf16 %v3036_v33 }
  0x1d   : > { %v365_v48 = vrot.slane %v3047_v41, 1  ;;  %v366_v49 = vrot.slane %v3049_v42, 1  ;;  %v3063_v50 = vunpack.c.l.bf16 %v2187_v38  ;;  %v3065_v51 = vunpack.c.h.bf16 %v2187_v38 }
  0x1e   : > { %4450 = vst [vmem:[#allocation5_spill] sm:$0xff] %v3055_v44  ;;  %v347_v53 = vsel %vm339_vm0, %v345_v40, %v346_v45  ;;  %v349_v54 = vsel %vm339_vm0, %v346_v45, %v348_v46  ;;  %v368_v55 = vrot.slane %v4374_v47, 1  ;;  %v4373_v56 = vunpack.c.l.bf16 %v3052_v43  ;;  %v3127_v45 = vld [vmem:[%s2981_s17 + $0x68] sm:$0x1] }
  0x1f   : > { %4451 = vst [vmem:[#allocation6_spill] sm:$0xff] %v3063_v50  ;;  %v3079_v59 = vpack.i.bf16 %v349_v54, %v347_v53  ;;  %v367_v60 = vsel %vm339_vm0, %v365_v48, %v366_v49  ;;  %v360_v61 = vrot.slane %v3063_v50, 1  ;;  %v361_v62 = vrot.slane %v3065_v51, 1  ;;  %v216_v53 = vld [vmem:[%s2981_s17 + $0x84] sm:$0xff]  }
  0x20   : > { %2302 = vrot.lane.b32.xlu1 %v3055_v44, %s2939_s18  ;;  %v369_v63 = vsel %vm339_vm0, %v366_v49, %v368_v55  ;;  %v363_v0 = vrot.slane %v4373_v56, 1  ;;  %v3087_v2 = vunpack.c.l.bf16 %v204_v52  ;;  %v3089_v8 = vunpack.c.h.bf16 %v204_v52 }
  0x21   : > { %4452 = vst [vmem:[#allocation7_spill] sm:$0xff] %v3079_v59  ;;  %2292 = vrot.lane.b32.xlu0 %v3079_v59, %s2939_s18  ;;  %v3096_v15 = vpack.i.bf16 %v369_v63, %v367_v60  ;;  %v362_v16 = vsel %vm339_vm0, %v360_v61, %v361_v62  ;;  %v4372_v17 = vunpack.c.l.bf16 %v3074_v57  ;;  %v3100_v18 = vunpack.c.l.bf16 %v2188_v58 }
  0x22   : > { %4453 = vst [vmem:[#allocation8_spill] sm:$0xff] %v3087_v2  ;;  %4454 = vst [vmem:[#allocation9_spill] sm:$0xff] %v3089_v8  ;;  %v364_v20 = vsel %vm339_vm0, %v361_v62, %v363_v0  ;;  %v375_v22 = vrot.slane %v3087_v2, 1  ;;  %v376_v24 = vrot.slane %v3089_v8, 1  ;;  %v3106_v25 = vunpack.c.h.bf16 %v2188_v58 }
  0x23   : > { %4455 = vst [vmem:[#allocation10_spill] sm:$0xff] %v3096_v15  ;;  %v3114_v30 = vpack.i.bf16 %v364_v20, %v362_v16  ;;  %v378_v31 = vrot.slane %v4372_v17, 1  ;;  %v4371_v32 = vunpack.c.l.bf16 %v3092_v14  ;;  %v370_v34 = vrot.slane %v3100_v18, 1  ;;  %v3150_v16 = vld [vmem:[%s2981_s17 + $0x8c] sm:$0x1] }
  0x24   : > { %2312 = vrot.lane.b32.xlu1 %v3096_v15, %s2939_s18  ;;  %v377_v35 = vsel %vm339_vm0, %v375_v22, %v376_v24  ;;  %v371_v38 = vrot.slane %v3106_v25, 1  ;;  %v3122_v39 = vunpack.c.l.bf16 %v210_v19  ;;  %v3124_v40 = vunpack.c.h.bf16 %v210_v19  ;;  %v2190_v19 = vld [vmem:[%s2981_s17 + $0x78] sm:$0xff]  }
  0x25   : > { %4456 = vst [vmem:[#allocation11_spill] sm:$0xff] %v3114_v30  ;;  %2307 = vrot.lane.b32.xlu0 %v3114_v30, %s2939_s18  ;;  %v379_v46 = vsel %vm339_vm0, %v376_v24, %v378_v31  ;;  %v373_v48 = vrot.slane %v4371_v32, 1  ;;  %v4370_v49 = vunpack.c.l.bf16 %v3109_v26  ;;  %v3135_v52 = vunpack.c.l.bf16 %v2189_v28  ;;  %v3185_v32 = vld [vmem:[%s2981_s17 + $0xa4] sm:$0x1]  ;;  %v3244_v30 = vld [vmem:[%s2981_s17 + $0xb0] sm:$0x1] }
  0x26   : > { %4457 = vst [vmem:[#allocation12_spill] sm:$0xff] %v3122_v39  ;;  %4458 = vst [vmem:[#allocation13_spill] sm:$0xff] %v3124_v40  ;;  %v3138_v54 = vpack.i.bf16 %v379_v46, %v377_v35  ;;  %v372_v55 = vsel %vm339_vm0, %v370_v34, %v371_v38  ;;  %v385_v58 = vrot.slane %v3122_v39, 1  ;;  %v386_v60 = vrot.slane %v3124_v40, 1  ;;  %v3168_v46 = vld [vmem:[%s2981_s17 + $0x80] sm:$0x1] }
  0x27   : > { %4459 = vst [vmem:[#allocation14_spill] sm:$0xff] %v3135_v52  ;;  %v374_v61 = vsel %vm339_vm0, %v371_v38, %v373_v48  ;;  %v388_v62 = vrot.slane %v4370_v49, 1  ;;  %v3146_v63 = vunpack.c.h.bf16 %v2189_v28  ;;  %v4369_v0 = vunpack.c.l.bf16 %v3127_v45 }
  0x28   : > { %4460 = vst [vmem:[#allocation15_spill] sm:$0xff] %v3138_v54  ;;  %2322 = vrot.lane.b32.xlu1 %v3138_v54, %s2939_s18  ;;  %v3155_v20 = vpack.i.bf16 %v374_v61, %v372_v55  ;;  %v387_v22 = vsel %vm339_vm0, %v385_v58, %v386_v60  ;;  %v380_v24 = vrot.slane %v3135_v52, 1  ;;  %v3159_v31 = vunpack.c.l.bf16 %v216_v53  ;;  %v222_v61 = vld [vmem:[%s2981_s17 + $0x9c] sm:$0xff]  }
  0x29   : > { %4461 = vst [vmem:[#allocation16_spill] sm:$0xff] %v3146_v63  ;;  %v389_v28 = vsel %vm339_vm0, %v386_v60, %v388_v62  ;;  %v381_v34 = vrot.slane %v3146_v63, 1  ;;  %v383_v35 = vrot.slane %v4369_v0, 1  ;;  %v3165_v38 = vunpack.c.h.bf16 %v216_v53  ;;  %v3226_v54 = vld [vmem:[%s2981_s17 + $0xbc] sm:$0x1] }
  0x2a   : > { %4462 = vst [vmem:[#allocation17_spill] sm:$0xff] %v3155_v20  ;;  %4463 = vst [vmem:[#allocation18_spill] sm:$0xff] %v3159_v31  ;;  %2317 = vrot.lane.b32.xlu0 %v3155_v20, %s2939_s18  ;;  %v3172_v48 = vpack.i.bf16 %v389_v28, %v387_v22  ;;  %v4376_v55 = vunpack.c.l.bf16 %v3150_v16  ;;  %v395_v58 = vrot.slane %v3159_v31, 1  ;;  %v3176_v60 = vunpack.c.l.bf16 %v2190_v19  ;;  %v2191_v22 = vld [vmem:[%s2981_s17 + $0x90] sm:$0xff]  }
  0x2b   : > { %4464 = vst [vmem:[#allocation19_spill] sm:$0xff] %v3165_v38  ;;  %v382_v62 = vsel %vm339_vm0, %v380_v24, %v381_v34  ;;  %v384_v53 = vsel %vm339_vm0, %v381_v34, %v383_v35  ;;  %v396_v0 = vrot.slane %v3165_v38, 1  ;;  %v3182_v49 = vunpack.c.h.bf16 %v2190_v19 }
  0x2c   : > { %4465 = vst [vmem:[#allocation20_spill] sm:$0xff] %v3172_v48  ;;  %4466 = vst [vmem:[#allocation21_spill] sm:$0xff] %v3176_v60  ;;  %2332 = vrot.lane.b32.xlu1 %v3172_v48, %s2939_s18  ;;  %v3190_v28 = vpack.i.bf16 %v384_v53, %v382_v62  ;;  %v398_v17 = vrot.slane %v4376_v55, 1  ;;  %v4384_v24 = vunpack.c.l.bf16 %v3168_v46  ;;  %v390_v34 = vrot.slane %v3176_v60, 1 }
  0x2d   : > { %4467 = vst [vmem:[#allocation22_spill] sm:$0xff] %v3182_v49  ;;  %v397_v35 = vsel %vm339_vm0, %v395_v58, %v396_v0  ;;  %v391_v19 = vrot.slane %v3182_v49, 1  ;;  %v3198_v56 = vunpack.c.l.bf16 %v222_v61  ;;  %v3200_v47 = vunpack.c.h.bf16 %v222_v61 }
  0x2e   : > { %4468 = vst [vmem:[#allocation23_spill] sm:$0xff] %v3190_v28  ;;  %2327 = vrot.lane.b32.xlu0 %v3190_v28, %s2939_s18  ;;  %v399_v62 = vsel %vm339_vm0, %v396_v0, %v398_v17  ;;  %v393_v53 = vrot.slane %v4384_v24, 1  ;;  %v4389_v58 = vunpack.c.l.bf16 %v3185_v32  ;;  %v3211_v55 = vunpack.c.l.bf16 %v2191_v22 }
  0x2f   : > { %4469 = vst [vmem:[#allocation24_spill] sm:$0xff] %v3198_v56  ;;  %4470 = vst [vmem:[#allocation25_spill] sm:$0xff] %v3200_v47  ;;  %v3214_v61 = vpack.i.bf16 %v399_v62, %v397_v35  ;;  %v392_v11 = vsel %vm339_vm0, %v390_v34, %v391_v19  ;;  %v405_v37 = vrot.slane %v3198_v56, 1  ;;  %v406_v48 = vrot.slane %v3200_v47, 1  ;;  %v2192_v35 = vld [vmem:[%s2981_s17 + $0xa8] sm:$0xff]  }
  0x30   : > { %4471 = vst [vmem:[#allocation26_spill] sm:$0xff] %v3211_v55  ;;  %v394_v28 = vsel %vm339_vm0, %v391_v19, %v393_v53  ;;  %v408_v17 = vrot.slane %v4389_v58, 1  ;;  %v3222_v0 = vunpack.c.h.bf16 %v2191_v22  ;;  %v4396_v24 = vunpack.c.l.bf16 %v3203_v5 }
  0x31   : > { %4472 = vst [vmem:[#allocation27_spill] sm:$0xff] %v3214_v61  ;;  %2342 = vrot.lane.b32.xlu1 %v3214_v61, %s2939_s18  ;;  %v3231_v34 = vpack.i.bf16 %v394_v28, %v392_v11  ;;  %v407_v62 = vsel %vm339_vm0, %v405_v37, %v406_v48  ;;  %v400_v20 = vrot.slane %v3211_v55, 1  ;;  %v3235_v19 = vunpack.c.l.bf16 %v228_v21 }
  0x32   : > { %4473 = vst [vmem:[#allocation28_spill] sm:$0xff] %v3222_v0  ;;  %v409_v53 = vsel %vm339_vm0, %v406_v48, %v408_v17  ;;  %v401_v22 = vrot.slane %v3222_v0, 1  ;;  %v403_v58 = vrot.slane %v4396_v24, 1  ;;  %v3241_v15 = vunpack.c.h.bf16 %v228_v21 }
  0x33   : > { %4474 = vst [vmem:[#allocation29_spill] sm:$0xff] %v3231_v34  ;;  %2337 = vrot.lane.b32.xlu0 %v3231_v34, %s2939_s18  ;;  %v3248_v11 = vpack.i.bf16 %v409_v53, %v407_v62  ;;  %v4401_v37 = vunpack.c.l.bf16 %v3226_v54  ;;  %v415_v28 = vrot.slane %v3235_v19, 1  ;;  %v3252_v61 = vunpack.c.l.bf16 %v2192_v35 }
  0x34   : > { %v402_v48 = vsel %vm339_vm0, %v400_v20, %v401_v22  ;;  %v404_v17 = vsel %vm339_vm0, %v401_v22, %v403_v58  ;;  %v416_v21 = vrot.slane %v3241_v15, 1  ;;  %v3257_v24 = vunpack.c.h.bf16 %v2192_v35 }
  0x35   : > { %4475 = vst [vmem:[#allocation30_spill] sm:$0xff] %v3248_v11  ;;  %2352 = vrot.lane.b32.xlu1 %v3248_v11, %s2939_s18  ;;  %v3261_v34 = vpack.i.bf16 %v404_v17, %v402_v48  ;;  %v418_v62 = vrot.slane %v4401_v37, 1  ;;  %v4413_v53 = vunpack.c.l.bf16 %v3244_v30  ;;  %v410_v44 = vrot.slane %v3252_v61, 1 }
  0x36   : > { %v417_v20 = vsel %vm339_vm0, %v415_v28, %v416_v21  ;;  %v411_v58 = vrot.slane %v3257_v24, 1  ;;  %v426_v22 = vrot.slane %v3026_v27, 2  ;;  %v427_v35 = vrot.slane %v3039_v36, 2 }
  0x37   : > { %4476 = vst [vmem:[#allocation31_spill] sm:$0xff] %v3261_v34  ;;  %2347 = vrot.lane.b32.xlu0 %v3261_v34, %s2939_s18  ;;  %v419_v48 = vsel %vm339_vm0, %v416_v21, %v418_v62  ;;  %v413_v17 = vrot.slane %v4413_v53, 1  ;;  %v4477_v37 = vunpack.c.l.bf16 %v3021_v23  ;;  %v421_v29 = vrot.slane %v2993_v6, 2 }
  0x38   : > { %v3279_v28 = vpack.i.bf16 %v419_v48, %v417_v20  ;;  %v412_v59 = vsel %vm339_vm0, %v410_v44, %v411_v58  ;;  %v428_v27 = vsel %vm420_vm1, %v426_v22, %v427_v35  ;;  %v422_v36 = vrot.slane %v3002_v10, 2 }
  0x39   : > { %v429_v11 = vrot.slane %v4477_v37, 2  ;;  %v414_v34 = vsel %vm339_vm0, %v411_v58, %v413_v17  ;;  %v4478_v62 = vunpack.c.l.bf16 %v2996_v7  ;;  %v436_v23 = vrot.slane %v3005_v12, 2 }
  0x3a   : > { %2362 = vrot.lane.b32.xlu1 %v3279_v28, %s2939_s18  ;;  %v3291_v37 = vpack.i.bf16 %v414_v34, %v412_v59  ;;  %v423_v44 = vsel %vm420_vm1, %v421_v29, %v422_v36  ;;  %v437_v22 = vrot.slane %v3007_v13, 2  ;;  %v431_v7 = vrot.slane %v2988_v3, 2 }
  0x3b   : > { %v430_v21 = vsel %vm420_vm1, %v427_v35, %v429_v11  ;;  %v424_v53 = vrot.slane %v4478_v62, 2  ;;  %v4479_v11 = vunpack.c.l.bf16 %v3000_v9  ;;  %v432_v48 = vrot.slane %v2990_v4, 2 }
  0x3c   : > { %v3293_v20 = vpack.i.bf16 %v430_v21, %v428_v27  ;;  %2357 = vrot.lane.b32.xlu0 %v3291_v37, %s2939_s18  ;;  %v438_v27 = vsel %vm420_vm1, %v436_v23, %v437_v22  ;;  %v4480_v34 = vunpack.c.l.bf16 %v2985_v1  ;;  %v446_v17 = vrot.slane %v3047_v41, 2  ;;  %s181_s18 = scalar_lea.vmem %s4368_s3, %s2125_s15 }
  0x3d   : > { %v425_v58 = vsel %vm420_vm1, %v422_v36, %v424_v53  ;;  %v439_v35 = vrot.slane %v4479_v11, 2  ;;  %v433_v9 = vsel %vm420_vm1, %v431_v7, %v432_v48  ;;  %v447_v53 = vrot.slane %v3049_v42, 2 }
  0x3e   : > { %v2366_v59 = vpack.i.bf16 %v425_v58, %v423_v44  ;;  %v434_v29 = vrot.slane %v4480_v34, 2  ;;  %v4481_v21 = vunpack.c.l.bf16 %v3036_v33  ;;  %2372 = vrot.lane.b32.xlu1 %v3293_v20, %s2940_s19  ;;  %v441_v23 = vrot.slane %v3063_v50, 2 }
  0x3f   : > { %v440_v36 = vsel %vm420_vm1, %v437_v22, %v439_v35  ;;  %v442_v58 = vrot.slane %v3065_v51, 2  ;;  %v448_v22 = vsel %vm420_vm1, %v446_v17, %v447_v53  ;;  %v4482_v35 = vunpack.c.l.bf16 %v3052_v43 }
  0x40   : > { %v449_v62 = vrot.slane %v4481_v21, 2  ;;  %v3315_v44 = vpack.i.bf16 %v440_v36, %v438_v27  ;;  %v435_v1 = vsel %vm420_vm1, %v432_v48, %v434_v29  ;;  %2367 = vrot.lane.b32.xlu0 %v2366_v59, %s2940_s19  ;;  %v456_v34 = vrot.slane %v3087_v2, 2 }
  0x41   : > { %v444_v33 = vrot.slane %v4482_v35, 2  ;;  %v3325_v7 = vpack.i.bf16 %v435_v1, %v433_v9  ;;  %v443_v27 = vsel %vm420_vm1, %v441_v23, %v442_v58  ;;  %v457_v48 = vrot.slane %v3089_v8, 2 }
  0x42   : > { %v450_v11 = vsel %vm420_vm1, %v447_v53, %v449_v62  ;;  %v4483_v36 = vunpack.c.l.bf16 %v3074_v57  ;;  %v451_v53 = vrot.slane %v3100_v18, 2  ;;  %v452_v43 = vrot.slane %v3106_v25, 2  ;;  %2382 = vrot.lane.b32.xlu1 %v3315_v44, %s2940_s19 }
  0x43   : > { %v445_v29 = vsel %vm420_vm1, %v442_v58, %v444_v33  ;;  %v3337_v59 = vpack.i.bf16 %v450_v11, %v448_v22  ;;  %v458_v9 = vsel %vm420_vm1, %v456_v34, %v457_v48  ;;  %v4484_v21 = vunpack.c.l.bf16 %v3092_v14 }
  0x44   : > { %v459_v17 = vrot.slane %v4483_v36, 2  ;;  %v466_v1 = vrot.slane %v3122_v39, 2  ;;  %v467_v57 = vrot.slane %v3124_v40, 2  ;;  %v4485_v58 = vunpack.c.l.bf16 %v3109_v26  ;;  %2377 = vrot.lane.b32.xlu0 %v3325_v7, %s2940_s19 }
  0x45   : > { %v454_v62 = vrot.slane %v4484_v21, 2  ;;  %v3349_v33 = vpack.i.bf16 %v445_v29, %v443_v27  ;;  %v453_v22 = vsel %vm420_vm1, %v451_v53, %v452_v43  ;;  %v461_v11 = vrot.slane %v3135_v52, 2 }
  0x46   : > { %v460_v23 = vsel %vm420_vm1, %v457_v48, %v459_v17  ;;  %v469_v35 = vrot.slane %v4485_v58, 2  ;;  %v462_v14 = vrot.slane %v3146_v63, 2  ;;  %v468_v36 = vsel %vm420_vm1, %v466_v1, %v467_v57  ;;  %2392 = vrot.lane.b32.xlu1 %v3337_v59, %s2940_s19 }
  0x47   : > { %v3354_v34 = vpack.i.bf16 %v460_v23, %v458_v9  ;;  %v455_v48 = vsel %vm420_vm1, %v452_v43, %v454_v62  ;;  %v4486_v26 = vunpack.c.l.bf16 %v3127_v45  ;;  %v476_v53 = vrot.slane %v3159_v31, 2 }
  0x48   : > { %v470_v27 = vsel %vm420_vm1, %v467_v57, %v469_v35  ;;  %v463_v29 = vsel %vm420_vm1, %v461_v11, %v462_v14  ;;  %v477_v21 = vrot.slane %v3165_v38, 2  ;;  %v4487_v43 = vunpack.c.l.bf16 %v3150_v16  ;;  %2387 = vrot.lane.b32.xlu0 %v3349_v33, %s2940_s19 }
  0x49   : > { %v464_v17 = vrot.slane %v4486_v26, 2  ;;  %v471_v1 = vrot.slane %v3176_v60, 2  ;;  %v472_v45 = vrot.slane %v3182_v49, 2  ;;  %v3373_v23 = vpack.i.bf16 %v455_v48, %v453_v22 }
  0x4a   : > { %v479_v62 = vrot.slane %v4487_v43, 2  ;;  %v4488_v57 = vunpack.c.l.bf16 %v3168_v46  ;;  %2402 = vrot.lane.b32.xlu1 %v3354_v34, %s2940_s19  ;;  %v3379_v35 = vpack.i.bf16 %v470_v27, %v468_v36  ;;  %v478_v16 = vsel %vm420_vm1, %v476_v53, %v477_v21 }
  0x4b   : > { %v465_v9 = vsel %vm420_vm1, %v462_v14, %v464_v17  ;;  %v486_v14 = vrot.slane %v3198_v56, 2  ;;  %v473_v17 = vsel %vm420_vm1, %v471_v1, %v472_v45  ;;  %v487_v22 = vrot.slane %v3200_v47, 2 }
  0x4c   : > { %v474_v58 = vrot.slane %v4488_v57, 2  ;;  %v3381_v11 = vpack.i.bf16 %v465_v9, %v463_v29  ;;  %v480_v26 = vsel %vm420_vm1, %v477_v21, %v479_v62  ;;  %v4489_v46 = vunpack.c.l.bf16 %v3185_v32  ;;  %2397 = vrot.lane.b32.xlu0 %v3373_v23, %s2940_s19 }
  0x4d   : > { %v481_v27 = vrot.slane %v3211_v55, 2  ;;  %v482_v29 = vrot.slane %v3222_v0, 2  ;;  %v4490_v53 = vunpack.c.l.bf16 %v3203_v5  ;;  %v3399_v21 = vpack.i.bf16 %v480_v26, %v478_v16 }
  0x4e   : > { %v489_v48 = vrot.slane %v4489_v46, 2  ;;  %v475_v36 = vsel %vm420_vm1, %v472_v45, %v474_v58  ;;  %2412 = vrot.lane.b32.xlu1 %v3379_v35, %s2940_s19  ;;  %v496_v32 = vrot.slane %v3235_v19, 2  ;;  %v497_v43 = vrot.slane %v3241_v15, 2 }
  0x4f   : > { %v484_v9 = vrot.slane %v4490_v53, 2  ;;  %v4491_v62 = vunpack.c.l.bf16 %v3226_v54  ;;  %v3405_v45 = vpack.i.bf16 %v475_v36, %v473_v17  ;;  %v488_v57 = vsel %vm420_vm1, %v486_v14, %v487_v22 }
  0x50   : > { %v490_v58 = vsel %vm420_vm1, %v487_v22, %v489_v48  ;;  %2407 = vrot.lane.b32.xlu0 %v3381_v11, %s2940_s19  ;;  %v483_v5 = vsel %vm420_vm1, %v481_v27, %v482_v29  ;;  %v491_v26 = vrot.slane %v3252_v61, 2  ;;  %v492_v46 = vrot.slane %v3257_v24, 2 }
  0x51   : > { %v499_v1 = vrot.slane %v4491_v62, 2  ;;  %v485_v16 = vsel %vm420_vm1, %v482_v29, %v484_v9  ;;  %v4492_v54 = vunpack.c.l.bf16 %v3244_v30  ;;  %v3419_v14 = vpack.i.bf16 %v490_v58, %v488_v57 }
  0x52   : > { %2422 = vrot.lane.b32.xlu1 %v3399_v21, %s2940_s19  ;;  %v498_v17 = vsel %vm420_vm1, %v496_v32, %v497_v43  ;;  %v3423_v48 = vpack.i.bf16 %v485_v16, %v483_v5  ;;  %v493_v36 = vsel %vm420_vm1, %v491_v26, %v492_v46  ;;  %v2451_v9 = vpack.i.bf16 %v2990_v4, %v2988_v3  ;;  %v4493_v32 = vld [vmem:[#allocation2_spill] sm:$0xff]  ;;  %v2927_v26 = vld [vmem:[%s4366_s1 + $0x8] sm:$0xff]  }
  0x53   : > { %v494_v53 = vrot.slane %v4492_v54, 2  ;;  %v500_v22 = vsel %vm420_vm1, %v497_v43, %v499_v1  ;;  %v4494_v43 = vld [vmem:[#allocation4_spill] sm:$0xff]  ;;  %v2461_v1 = vpack.i.bf16 %v3065_v51, %v3063_v50  ;;  %v2456_v57 = vpack.i.bf16 %v3007_v13, %v3005_v12  ;;  %v2926_v5 = vld [vmem:[%s4366_s1] sm:$0xff]   ;;  %v4495_v54 = vld [vmem:[#allocation7_spill] sm:$0xff] }
  0x54   : > { %2417 = vrot.lane.b32.xlu0 %v3405_v45, %s2940_s19  ;;  %v3428_v27 = vpack.i.bf16 %v500_v22, %v498_v17  ;;  %v2446_v62 = vpack.i.bf16 %v4494_v43, %v4493_v32  ;;  %v3454_v58 = vpack.i.bf16 %v3106_v25, %v3100_v18  ;;  %v2466_v16 = vpack.i.bf16 %v3049_v42, %v3047_v41  ;;  %v2929_v17 = vld [vmem:[%s4366_s1 + $0x18] sm:$0xff]   ;;  %v4496_v22 = vld [vmem:[#allocation3_spill] sm:$0xff] }
  0x55   : > { %v495_v30 = vsel %vm420_vm1, %v492_v46, %v494_v53  ;;  %2215 = vmatprep.subr.bf16.mxu0 %v2926_v5  ;;  %2257 = vmatprep.subr.bf16.mxu1 %v2926_v5  ;;  %v2476_v46 = vpack.i.bf16 %v3089_v8, %v3087_v2  ;;  %v2928_v53 = vld [vmem:[%s4366_s1 + $0x10] sm:$0xff]  }
  0x56   : > { %2432 = vrot.lane.b32.xlu1 %v3419_v14, %s2940_s19  ;;  %v3435_v29 = vpack.i.bf16 %v495_v30, %v493_v36  ;;  %2216 = vmatpush3.bf16.msra.mxu0 %v2926_v5  ;;  %v2930_v36 = vld [vmem:[%s4366_s1 + $0x20] ss:$0 sps:$4 sm:$0xff]   ;;  %v4497_v30 = vld [vmem:[#allocation5_spill] sm:$0xff] }
  0x57   : > { %2262 = vmatpush3.bf16.msra.mxu1 %v2926_v5  ;;  %2217 = vmatprep.subr.bf16.mxu0 %v2927_v26 }
  0x58   : > { %2427 = vrot.lane.b32.xlu0 %v3423_v48, %s2940_s19  ;;  %2258 = vmatprep.subr.bf16.mxu1 %v2927_v26 }
  0x5a   : > { %2442 = vrot.lane.b32.xlu1 %v3428_v27, %s2940_s19  ;;  %2218 = vmatpush3.bf16.msra.mxu0 %v2927_v26 }
  0x5b   : > { %2263 = vmatpush3.bf16.msra.mxu1 %v2927_v26  ;;  %2219 = vmatprep.subr.bf16.mxu0 %v2928_v53 }
  0x5c   : > { %2437 = vrot.lane.b32.xlu0 %v3435_v29, %s2940_s19  ;;  %2259 = vmatprep.subr.bf16.mxu1 %v2928_v53 }
  0x5e   : > { %2452 = vrot.lane.b32.xlu1 %v2451_v9, %s2941_s20  ;;  %2220 = vmatpush3.bf16.msra.mxu0 %v2928_v53 }
  0x5f   : > { %2264 = vmatpush3.bf16.msra.mxu1 %v2928_v53  ;;  %2221 = vmatprep.subr.bf16.mxu0 %v2929_v17 }
  0x60   : > { %2447 = vrot.lane.b32.xlu0 %v2446_v62, %s2941_s20  ;;  %2260 = vmatprep.subr.bf16.mxu1 %v2929_v17 }
  0x62   : > { %2462 = vrot.lane.b32.xlu1 %v2461_v1, %s2941_s20  ;;  %2222 = vmatpush3.bf16.msra.mxu0 %v2929_v17 }
  0x63   : > { %2265 = vmatpush3.bf16.msra.mxu1 %v2929_v17  ;;  %2267 = vmatprep.subr.msk.bf16.mxu0 %vm1660_vm2, %v2930_v36 }
  0x64   : > { %2457 = vrot.lane.b32.xlu0 %v2456_v57, %s2941_s20  ;;  %2268 = vmatprep.subr.msk.bf16.mxu1 %vm1660_vm2, %v2930_v36 }
  0x66   : > { %2472 = vrot.lane.b32.xlu1 %v3454_v58, %s2941_s20 }
  0x68   : > { %2467 = vrot.lane.b32.xlu0 %v2466_v16, %s2941_s20 }
  0x6a   : > { %2482 = vrot.lane.b32.xlu1 %v4495_v54, %s2942_s25 }
  0x6c   : > { %2477 = vrot.lane.b32.xlu0 %v2476_v46, %s2941_s20 }
  0x6e   : > { %2492 = vrot.lane.b32.xlu1 %v3293_v20, %s2943_s28  ;;  %v1662_v20 = vsel %vm1660_vm2, %v2930_v36, 0 }
  0x6f   : > { %2224 = vmatpush3.bf16.msra.mxu0 %v1662_v20  ;;  %2266 = vmatpush3.bf16.msra.mxu1 %v1662_v20 }
  0x70   : > { %2487 = vrot.lane.b32.xlu0 %v4496_v22, %s2942_s25 }
  0x72   : > { %2502 = vrot.lane.b32.xlu1 %v2451_v9, %s2944_s4  ;;  %v4498_v9 = vld [vmem:[#allocation11_spill] sm:$0xff] }
  0x74   : > { %2497 = vrot.lane.b32.xlu0 %v3325_v7, %s2943_s28 }
  0x76   : > { %2512 = vrot.lane.b32.xlu1 %v4496_v22, %s2945_s7  ;;  %v4505_v22 = vld [vmem:[#allocation15_spill] sm:$0xff] }
  0x78   : > { %2507 = vrot.lane.b32.xlu0 %v2456_v57, %s2944_s4 }
  0x7a   : > { %2522 = vrot.lane.b32.xlu1 %v3325_v7, %s2946_s8 }
  0x7c   : > { %2517 = vrot.lane.b32.xlu0 %v4497_v30, %s2945_s7 }
  0x7e   : > { %2532 = vrot.lane.b32.xlu1 %v4497_v30, %s2942_s25 }
  0x80   : > { %2527 = vrot.lane.b32.xlu0 %v3315_v44, %s2946_s8 }
  0x82   : > { %2542 = vrot.lane.b32.xlu1 %v3315_v44, %s2943_s28  ;;  %v4499_v44 = vld [vmem:[#allocation10_spill] sm:$0xff] }
  0x84   : > { %2537 = vrot.lane.b32.xlu0 %v4498_v9, %s2942_s25 }
  0x86   : > { %2552 = vrot.lane.b32.xlu1 %v2461_v1, %s2944_s4 }
  0x88   : > { %2547 = vrot.lane.b32.xlu0 %v3349_v33, %s2943_s28 }
  0x8a   : > { %2562 = vrot.lane.b32.xlu1 %v4498_v9, %s2945_s7 }
  0x8c   : > { %2557 = vrot.lane.b32.xlu0 %v2466_v16, %s2944_s4  ;;  %v4500_v16 = vld [vmem:[#allocation17_spill] sm:$0xff] }
  0x8e   : > { %v3510_v7 = vpop.permute.xlu1 %2297  ;;  %2572 = vrot.lane.b32.xlu1 %v3349_v33, %s2946_s8  ;;  %v3514_v62 = vpop.permute.xlu0 %2287 }
  0x90   : > { %2567 = vrot.lane.b32.xlu0 %v4499_v44, %s2945_s7 }
  0x92   : > { %v3518_v57 = vpop.permute.xlu1 %2302  ;;  %2582 = vrot.lane.b32.xlu1 %v4499_v44, %s2942_s25  ;;  %v2661_v44 = vpack.i.bf16 %v3124_v40, %v3122_v39  ;;  %v4514_v40 = vld [vmem:[#allocation29_spill] sm:$0xff] }
  0x93   : > { %v3522_v1 = vpop.permute.xlu0 %2292 }
  0x94   : > { %2577 = vrot.lane.b32.xlu0 %v3337_v59, %s2946_s8 }
  0x96   : > { %v3526_v5 = vpop.permute.xlu1 %2312  ;;  %2592 = vrot.lane.b32.xlu1 %v3337_v59, %s2943_s28 }
  0x97   : > { %v3530_v33 = vpop.permute.xlu0 %2307 }
  0x98   : > { %2587 = vrot.lane.b32.xlu0 %v4500_v16, %s2942_s25 }
  0x9a   : > { %2602 = vrot.lane.b32.xlu1 %v3454_v58, %s2944_s4  ;;  %v3536_v26 = vpop.permute.xlu1 %2322  ;;  %v2631_v58 = vpack.i.bf16 %v3146_v63, %v3135_v52 }
  0x9b   : > { %4501 = vst [vmem:[#allocation2_spill] sm:$0xff] %v3536_v26 }
  0x9c   : > { %2597 = vrot.lane.b32.xlu0 %v3373_v23, %s2943_s28  ;;  %v3540_v54 = vpop.permute.xlu0 %2317 }
  0x9e   : > { %2612 = vrot.lane.b32.xlu1 %v4500_v16, %s2945_s7  ;;  %v3544_v53 = vpop.permute.xlu1 %2332 }
  0x9f   : > { %4502 = vst [vmem:[#allocation4_spill] sm:$0xff] %v3544_v53 }
  0xa0   : > { %2607 = vrot.lane.b32.xlu0 %v2476_v46, %s2944_s4  ;;  %v3547_v59 = vpop.permute.xlu0 %2327 }
  0xa1   : > { %4503 = vst [vmem:[#allocation7_spill] sm:$0xff] %v3547_v59 }
  0xa2   : > { %2622 = vrot.lane.b32.xlu1 %v3373_v23, %s2946_s8  ;;  %v4509_v23 = vld [vmem:[#allocation23_spill] sm:$0xff] }
  0xa3   : > { %v3553_v17 = vpop.permute.xlu1 %2342 }
  0xa4   : > { %4504 = vst [vmem:[#allocation3_spill] sm:$0xff] %v3553_v17  ;;  %2617 = vrot.lane.b32.xlu0 %v4505_v22, %s2945_s7 }
  0xa5   : > { %v3557_v36 = vpop.permute.xlu0 %2337 }
  0xa6   : > { %4506 = vst [vmem:[#allocation5_spill] sm:$0xff] %v3557_v36  ;;  %2632 = vrot.lane.b32.xlu1 %v2631_v58, %s2941_s20  ;;  %v4510_v36 = vld [vmem:[#allocation20_spill] sm:$0xff] }
  0xa7   : > { %v3560_v20 = vpop.permute.xlu1 %2352 }
  0xa8   : > { %4507 = vst [vmem:[#allocation11_spill] sm:$0xff] %v3560_v20  ;;  %2627 = vrot.lane.b32.xlu0 %v3354_v34, %s2946_s8 }
  0xa9   : > { %v3564_v46 = vpop.permute.xlu0 %2347 }
  0xaa   : > { %4508 = vst [vmem:[#allocation10_spill] sm:$0xff] %v3564_v46  ;;  %2642 = vrot.lane.b32.xlu1 %v4509_v23, %s2942_s25 }
  0xac   : > { %2637 = vrot.lane.b32.xlu0 %v4505_v22, %s2942_s25  ;;  %v2363_v30 = vpop.permute.xlu1 %2362 }
  0xae   : > { %v2358_v9 = vpop.permute.xlu0 %2357  ;;  %2652 = vrot.lane.b32.xlu1 %v3381_v11, %s2943_s28 }
  0xb0   : > { %2647 = vrot.lane.b32.xlu0 %v3354_v34, %s2943_s28  ;;  %v3576_v16 = vpop.permute.xlu1 %2372 }
  0xb2   : > { %v3578_v46 = vpop.permute.xlu0 %2367  ;;  %2662 = vrot.lane.b32.xlu1 %v2661_v44, %s2944_s4 }
  0xb4   : > { %2657 = vrot.lane.b32.xlu0 %v2631_v58, %s2944_s4  ;;  %v3582_v22 = vpop.permute.xlu1 %2382  ;;  %v2691_v58 = vpack.i.bf16 %v3182_v49, %v3176_v60 }
  0xb6   : > { %v3584_v20 = vpop.permute.xlu0 %2377  ;;  %2672 = vrot.lane.b32.xlu1 %v4510_v36, %s2945_s7 }
  0xb8   : > { %2667 = vrot.lane.b32.xlu0 %v4509_v23, %s2945_s7  ;;  %v3590_v17 = vpop.permute.xlu1 %2392 }
  0xba   : > { %v3592_v34 = vpop.permute.xlu0 %2387  ;;  %2682 = vrot.lane.b32.xlu1 %v3379_v35, %s2946_s8 }
  0xbc   : > { %2677 = vrot.lane.b32.xlu0 %v3381_v11, %s2946_s8  ;;  %v3600_v52 = vpop.permute.xlu1 %2402 }
  0xbd   : > { %4511 = vst [vmem:[#allocation17_spill] sm:$0xff] %v3600_v52 }
  0xbe   : > { %v3602_v63 = vpop.permute.xlu0 %2397  ;;  %2692 = vrot.lane.b32.xlu1 %v2691_v58, %s2941_s20 }
  0xc0   : > { %2687 = vrot.lane.b32.xlu0 %v2661_v44, %s2941_s20  ;;  %v3606_v23 = vpop.permute.xlu1 %2412  ;;  %v2721_v44 = vpack.i.bf16 %v3165_v38, %v3159_v31 }
  0xc1   : > { %4512 = vst [vmem:[#allocation15_spill] sm:$0xff] %v3606_v23  ;;  %v2364_v23 = vunpack.i.l.bf16 %v2363_v30 }
  0xc2   : > { %v3608_v39 = vpop.permute.xlu0 %2407  ;;  %2702 = vrot.lane.b32.xlu1 %v4514_v40, %s2942_s25 }
  0xc3   : > { %4513 = vst [vmem:[#allocation23_spill] sm:$0xff] %v3608_v39  ;;  %v2365_v39 = vunpack.i.h.bf16 %v2363_v30 }
  0xc4   : > { %2697 = vrot.lane.b32.xlu0 %v4510_v36, %s2942_s25  ;;  %v3614_v60 = vpop.permute.xlu1 %2422  ;;  %v2360_v36 = vunpack.i.h.bf16 %v2358_v9 }
  0xc5   : > { %4515 = vst [vmem:[#allocation20_spill] sm:$0xff] %v3614_v60  ;;  %v2359_v60 = vunpack.i.l.bf16 %v2358_v9  ;;  %v1327_v31 = vsel %vm1295_vm3, %v3241_v15, %v2365_v39 }
  0xc6   : > { %v3616_v11 = vpop.permute.xlu0 %2417  ;;  %2712 = vrot.lane.b32.xlu1 %v3405_v45, %s2943_s28  ;;  %v1325_v39 = vsel %vm1295_vm3, %v3257_v24, %v2360_v36  ;;  %v2751_v36 = vpack.i.bf16 %v3222_v0, %v3211_v55  ;;  %v3694_v55 = vld [vmem:[%s2981_s17 + $0xc8] sm:$0x1] }
  0xc7   : > { %4516 = vst [vmem:[#allocation29_spill] sm:$0xff] %v3616_v11 }
  0xc8   : > { %2707 = vrot.lane.b32.xlu0 %v3379_v35, %s2943_s28  ;;  %v3624_v49 = vpop.permute.xlu1 %2432  ;;  %v1326_v35 = vsel %vm1295_vm3, %v3235_v19, %v2364_v23  ;;  %v1324_v23 = vsel %vm1295_vm3, %v3252_v61, %v2359_v60 }
  0xc9   : > { %4517 = vst [vmem:[#allocation32_spill] sm:$0xff] %v3624_v49 }
  0xca   : > { %v3626_v59 = vpop.permute.xlu0 %2427  ;;  %2722 = vrot.lane.b32.xlu1 %v2721_v44, %s2944_s4 }
  0xcb   : > { %4518 = vst [vmem:[#allocation33_spill] sm:$0xff] %v3626_v59  ;;  %v4519_v59 = vld [vmem:[#allocation27_spill] sm:$0xff] }
  0xcc   : > { %2717 = vrot.lane.b32.xlu0 %v2691_v58, %s2944_s4  ;;  %v2443_v11 = vpop.permute.xlu1 %2442 }
  0xcd   : > { %v2445_v53 = vunpack.i.h.bf16 %v2443_v11  ;;  %v2444_v2 = vunpack.i.l.bf16 %v2443_v11 }
  0xce   : > { %v2438_v30 = vpop.permute.xlu0 %2437  ;;  %2732 = vrot.lane.b32.xlu1 %v4519_v59, %s2945_s7 }
  0xcf   : > { %v3637_v49 = vsel %vm1328_vm4, %v1327_v31, %v2445_v53  ;;  %v3640_v9 = vsel %vm1328_vm4, %v1326_v35, %v2444_v2  ;;  %v2440_v58 = vunpack.i.h.bf16 %v2438_v30  ;;  %v2439_v38 = vunpack.i.l.bf16 %v2438_v30  ;;  %v2193_v35 = vld [vmem:[%s2981_s17 + $0xc0] sm:$0xff]  }
  0xd0   : > { %4520 = vst [vmem:[#allocation27_spill] sm:$0xff] %v3637_v49  ;;  %4521 = vst [vmem:[#allocation34_spill] sm:$0xff] %v3640_v9  ;;  %2727 = vrot.lane.b32.xlu0 %v4514_v40, %s2945_s7  ;;  %v3648_v11 = vpop.permute.xlu1 %2452  ;;  %v3689_v9 = vpack.i.bf16 %v3200_v47, %v3198_v56  ;;  %v3691_v49 = vunpack.c.h.bf16 %v2193_v35 }
  0xd1   : > { %v3651_v31 = vsel %vm1328_vm4, %v1324_v23, %v2439_v38  ;;  %v3654_v2 = vsel %vm1328_vm4, %v1325_v39, %v2440_v58  ;;  %v4526_v58 = vld [vmem:[#allocation31_spill] sm:$0xff]  ;;  %v2320_v39 = vunpack.i.h.bf16 %v3540_v54  ;;  %v2400_v23 = vunpack.i.h.bf16 %v3602_v63 }
  0xd2   : > { %4522 = vst [vmem:[#allocation35_spill] sm:$0xff] %v3651_v31  ;;  %4523 = vst [vmem:[#allocation36_spill] sm:$0xff] %v3654_v2  ;;  %v3656_v53 = vpop.permute.xlu0 %2447  ;;  %2742 = vrot.lane.b32.xlu1 %v3399_v21, %s2946_s8  ;;  %v2399_v2 = vunpack.i.l.bf16 %v3602_v63  ;;  %v3685_v31 = vunpack.c.l.bf16 %v2193_v35  ;;  %v3700_v63 = vpack.i.bf16 %v3257_v24, %v3252_v61  ;;  %v4441_v24 = vunpack.c.l.bf16 %v3694_v55 }
  0xd4   : > { %2737 = vrot.lane.b32.xlu0 %v3405_v45, %s2946_s8  ;;  %v3664_v40 = vpop.permute.xlu1 %2462  ;;  %v2319_v45 = vunpack.i.l.bf16 %v3540_v54  ;;  %v504_v61 = vrot.slane %v3685_v31, 1 }
  0xd6   : > { %v3666_v60 = vpop.permute.xlu0 %2457  ;;  %2752 = vrot.lane.b32.xlu1 %v2751_v36, %s2941_s20  ;;  %v1308_v0 = vsel %vm1295_vm3, %v3100_v18, %v2319_v45 }
  0xd7   : > { %v1341_v35 = vsel %vm1328_vm4, %v1308_v0, %v2399_v2  ;;  %v4442_v0 = vrot.slane %v3691_v49, 1  ;;  %v2289_v2 = vunpack.i.l.bf16 %v3514_v62 }
  0xd8   : > { %2747 = vrot.lane.b32.xlu0 %v2721_v44, %s2941_s20  ;;  %v3670_v38 = vpop.permute.xlu1 %2472 }
  0xd9   : > { %4524 = vst [vmem:[#allocation37_spill] sm:$0xff] %v3670_v38 }
  0xda   : > { %v3673_v30 = vpop.permute.xlu0 %2467  ;;  %2762 = vrot.lane.b32.xlu1 %v4526_v58, %s2942_s25 }
  0xdb   : > { %4525 = vst [vmem:[#allocation38_spill] sm:$0xff] %v3673_v30 }
  0xdc   : > { %2757 = vrot.lane.b32.xlu0 %v4519_v59, %s2942_s25  ;;  %v3683_v44 = vpop.permute.xlu1 %2482  ;;  %v1309_v59 = vsel %vm1295_vm3, %v3106_v25, %v2320_v39  ;;  %v2290_v25 = vunpack.i.h.bf16 %v3514_v62  ;;  %v2375_v62 = vunpack.i.h.bf16 %v3576_v16 }
  0xdd   : > { %v1342_v8 = vsel %vm1328_vm4, %v1309_v59, %v2400_v23  ;;  %v2374_v23 = vunpack.i.l.bf16 %v3576_v16  ;;  %v3740_v59 = vrot.slane %v4441_v24, 1  ;;  %v1296_v16 = vsel %vm1295_vm3, %v2993_v6, %v2289_v2 }
  0xde   : > { %v2478_v54 = vpop.permute.xlu0 %2477  ;;  %2772 = vrot.lane.b32.xlu1 %v3423_v48, %s2943_s28  ;;  %v2450_v24 = vunpack.i.h.bf16 %v3656_v53  ;;  %v2484_v6 = vunpack.i.l.bf16 %v3683_v44 }
  0xdf   : > { %v2480_v56 = vunpack.i.h.bf16 %v2478_v54  ;;  %v2479_v47 = vunpack.i.l.bf16 %v2478_v54 }
  0xe0   : > { %2767 = vrot.lane.b32.xlu0 %v3399_v21, %s2943_s28  ;;  %v2493_v52 = vpop.permute.xlu1 %2492  ;;  %v2295_v21 = vunpack.i.h.bf16 %v3522_v1 }
  0xe1   : > { %v3714_v39 = vsel %vm1361_vm5, %v1341_v35, %v2479_v47  ;;  %v3717_v18 = vsel %vm1361_vm5, %v1342_v8, %v2480_v56  ;;  %v3728_v47 = vpack.i.bf16 %v3241_v15, %v3235_v19  ;;  %v2294_v56 = vunpack.i.l.bf16 %v3522_v1 }
  0xe2   : > { %4527 = vst [vmem:[#allocation31_spill] sm:$0xff] %v3714_v39  ;;  %4528 = vst [vmem:[#allocation39_spill] sm:$0xff] %v3717_v18  ;;  %v3722_v45 = vpop.permute.xlu0 %2487  ;;  %2782 = vrot.lane.b32.xlu1 %v3689_v9, %s2944_s4  ;;  %v3733_v8 = vpack.i.bf16 %v3691_v49, %v3685_v31  ;;  %v1297_v15 = vsel %vm1295_vm3, %v3002_v10, %v2290_v25  ;;  %v2370_v19 = vunpack.i.h.bf16 %v3578_v46  ;;  %v2369_v1 = vunpack.i.l.bf16 %v3578_v46  ;;  %v4529_v25 = vld [vmem:[#allocation30_spill] sm:$0xff] }
  0xe3   : > { %v3749_v35 = vsel %vm339_vm0, %v504_v61, %v4442_v0  ;;  %v2449_v18 = vunpack.i.l.bf16 %v3656_v53  ;;  %v1298_v46 = vsel %vm1295_vm3, %v4493_v32, %v2294_v56  ;;  %v2454_v61 = vunpack.i.l.bf16 %v3648_v11 }
  0xe4   : > { %2777 = vrot.lane.b32.xlu0 %v2751_v36, %s2944_s4  ;;  %v2503_v54 = vpop.permute.xlu1 %2502  ;;  %v1299_v36 = vsel %vm1295_vm3, %v4494_v43, %v2295_v21  ;;  %v2485_v0 = vunpack.i.h.bf16 %v3683_v44  ;;  %v1331_v43 = vsel %vm1328_vm4, %v1298_v46, %v2374_v23  ;;  %v2495_v21 = vunpack.i.h.bf16 %v2493_v52 }
  0xe5   : > { %v1332_v2 = vsel %vm1328_vm4, %v1299_v36, %v2375_v62  ;;  %v2494_v53 = vunpack.i.l.bf16 %v2493_v52  ;;  %v1329_v26 = vsel %vm1328_vm4, %v1296_v16, %v2369_v1  ;;  %v1330_v32 = vsel %vm1328_vm4, %v1297_v15, %v2370_v19 }
  0xe6   : > { %v2498_v10 = vpop.permute.xlu0 %2497  ;;  %2792 = vrot.lane.b32.xlu1 %v4529_v25, %s2945_s7  ;;  %v2505_v56 = vunpack.i.h.bf16 %v2503_v54  ;;  %v2504_v38 = vunpack.i.l.bf16 %v2503_v54  ;;  %v1362_v30 = vsel %vm1361_vm5, %v1329_v26, %v2449_v18  ;;  %v1363_v44 = vsel %vm1361_vm5, %v1330_v32, %v2450_v24 }
  0xe7   : > { %v2455_v52 = vunpack.i.h.bf16 %v3648_v11  ;;  %v1395_v62 = vsel %vm1394_vm6, %v1362_v30, %v2484_v6  ;;  %v1396_v15 = vsel %vm1394_vm6, %v1363_v44, %v2485_v0  ;;  %v2490_v24 = vunpack.i.h.bf16 %v3722_v45 }
  0xe8   : > { %2787 = vrot.lane.b32.xlu0 %v4526_v58, %s2945_s7  ;;  %v2513_v39 = vpop.permute.xlu1 %2512  ;;  %v1364_v58 = vsel %vm1361_vm5, %v1331_v43, %v2454_v61  ;;  %v1428_v54 = vsel %vm1427_vm7, %v1395_v62, %v2494_v53  ;;  %v1429_v26 = vsel %vm1427_vm7, %v1396_v15, %v2495_v21  ;;  %v2500_v16 = vunpack.i.h.bf16 %v2498_v10 }
  0xe9   : > { %v2515_v50 = vunpack.i.h.bf16 %v2513_v39  ;;  %v2514_v23 = vunpack.i.l.bf16 %v2513_v39  ;;  %v2489_v39 = vunpack.i.l.bf16 %v3722_v45  ;;  %v1461_v11 = vsel %vm1460_vm8, %v1428_v54, %v2504_v38 }
  0xea   : > { %v2508_v46 = vpop.permute.xlu0 %2507  ;;  %2802 = vrot.lane.b32.xlu1 %v3419_v14, %s2946_s8  ;;  %v1462_v19 = vsel %vm1460_vm8, %v1429_v26, %v2505_v56  ;;  %v2499_v0 = vunpack.i.l.bf16 %v2498_v10  ;;  %v1365_v21 = vsel %vm1361_vm5, %v1332_v2, %v2455_v52  ;;  %v509_v2 = vrot.slane %v3685_v31, 2  ;;  %v234_v26 = vld [vmem:[%s2981_s17 + $0xcc] sm:$0xff]  }
  0xeb   : > { %v1494_v61 = vsel %vm1493_vm9, %v1461_v11, %v2514_v23  ;;  %v1495_v45 = vsel %vm1493_vm9, %v1462_v19, %v2515_v50  ;;  %v2510_v6 = vunpack.i.h.bf16 %v2508_v46  ;;  %v2509_v43 = vunpack.i.l.bf16 %v2508_v46 }
  0xec   : > { %2797 = vrot.lane.b32.xlu0 %v3423_v48, %s2946_s8  ;;  %v2523_v18 = vpop.permute.xlu1 %2522  ;;  %v1397_v44 = vsel %vm1394_vm6, %v1364_v58, %v2489_v39  ;;  %v1398_v50 = vsel %vm1394_vm6, %v1365_v21, %v2490_v24  ;;  %v4530_v23 = vrot.slane %v3691_v49, 1  ;;  %v510_v58 = vrot.slane %v3691_v49, 2 }
  0xed   : > { %v2525_v1 = vunpack.i.h.bf16 %v2523_v18  ;;  %v2524_v30 = vunpack.i.l.bf16 %v2523_v18  ;;  %v1430_v52 = vsel %vm1427_vm7, %v1397_v44, %v2499_v0  ;;  %v1431_v62 = vsel %vm1427_vm7, %v1398_v50, %v2500_v16  ;;  %v3816_v18 = vld [vmem:[%s2981_s17 + $0xd4] sm:$0x1] }
  0xee   : > { %v2518_v36 = vpop.permute.xlu0 %2517  ;;  %2812 = vrot.lane.b32.xlu1 %v3700_v63, %s2941_s20  ;;  %v508_v46 = vsel %vm339_vm0, %v4530_v23, %v3740_v59  ;;  %v4531_v15 = vunpack.c.l.bf16 %v3694_v55  ;;  %v1463_v59 = vsel %vm1460_vm8, %v1430_v52, %v2509_v43  ;;  %v1464_v31 = vsel %vm1460_vm8, %v1431_v62, %v2510_v6 }
  0xef   : > { %v1527_v48 = vsel %vm1526_vm10, %v1494_v61, %v2524_v30  ;;  %v1528_v38 = vsel %vm1526_vm10, %v1495_v45, %v2525_v1  ;;  %v2520_v53 = vunpack.i.h.bf16 %v2518_v36  ;;  %v2519_v32 = vunpack.i.l.bf16 %v2518_v36 }
  0xf0   : > { %2807 = vrot.lane.b32.xlu0 %v3689_v9, %s2941_s20  ;;  %v3795_v10 = vpop.permute.xlu1 %2532  ;;  %v1559_v56 = vpack.c.bf16 %v1528_v38, %v1527_v48  ;;  %v512_v54 = vrot.slane %v4531_v15, 2  ;;  %v2300_v11 = vunpack.i.h.bf16 %v3510_v7  ;;  %v2299_v19 = vunpack.i.l.bf16 %v3510_v7 }
  0xf1   : > { %v1496_v1 = vsel %vm1493_vm9, %v1463_v59, %v2519_v32  ;;  %v1497_v49 = vsel %vm1493_vm9, %v1464_v31, %v2520_v53  ;;  %v3826_v0 = vunpack.c.l.bf16 %v234_v26  ;;  %v3828_v36 = vunpack.c.h.bf16 %v234_v26 }
  0xf2   : > { %v2528_v9 = vpop.permute.xlu0 %2527  ;;  %2822 = vrot.lane.b32.xlu1 %v3291_v37, %s2942_s25  ;;  %2225 = vmatprep.mubr.msk.bf16.mxu0 %vm1611_vm11, %v1559_v56  ;;  %v2305_v61 = vunpack.i.h.bf16 %v3518_v57  ;;  %v3836_v6 = vpack.i.bf16 %v508_v46, %v3749_v35  ;;  %v2304_v43 = vunpack.i.l.bf16 %v3518_v57  ;;  %v3841_v48 = vsel %vm420_vm1, %v509_v2, %v510_v58 }
  0xf3   : > { %v2530_v24 = vunpack.i.h.bf16 %v2528_v9  ;;  %v2529_v39 = vunpack.i.l.bf16 %v2528_v9  ;;  %v3844_v38 = vsel %vm420_vm1, %v510_v58, %v512_v54  ;;  %v1301_v21 = vsel %vm1295_vm3, %v2990_v4, %v2300_v11 }
  0xf4   : > { %2817 = vrot.lane.b32.xlu0 %v4529_v25, %s2942_s25  ;;  %v2543_v55 = vpop.permute.xlu1 %2542  ;;  %v290_v25 = vunpack.c.l.bf16 %v3816_v18  ;;  %v1300_v53 = vsel %vm1295_vm3, %v2988_v3, %v2299_v19  ;;  %v2385_v32 = vunpack.i.h.bf16 %v3582_v22  ;;  %v2384_v35 = vunpack.i.l.bf16 %v3582_v22 }
  0xf5   : > { %v1529_v30 = vsel %vm1526_vm10, %v1496_v1, %v2529_v39  ;;  %v1530_v16 = vsel %vm1526_vm10, %v1497_v49, %v2530_v24  ;;  %v2380_v56 = vunpack.i.h.bf16 %v3584_v20  ;;  %v2379_v44 = vunpack.i.l.bf16 %v3584_v20 }
  0xf6   : > { %v1560_v45 = vpack.c.bf16 %v1530_v16, %v1529_v30  ;;  %v3831_v7 = vpop.permute.xlu0 %2537  ;;  %2832 = vrot.lane.b32.xlu1 %v3435_v29, %s2943_s28  ;;  %v517_v50 = vrot.slane %v3826_v0, 1  ;;  %v518_v4 = vrot.slane %v3828_v36, 1  ;;  %v1303_v3 = vsel %vm1295_vm3, %v3007_v13, %v2305_v61 }
  0xf7   : > { %v2460_v23 = vunpack.i.h.bf16 %v3666_v60  ;;  %v2459_v22 = vunpack.i.l.bf16 %v3666_v60  ;;  %v1302_v20 = vsel %vm1295_vm3, %v3005_v12, %v2304_v43  ;;  %v2464_v2 = vunpack.i.l.bf16 %v3664_v40 }
  0xf8   : > { %2827 = vrot.lane.b32.xlu0 %v3419_v14, %s2943_s28  ;;  %2226 = vmatmul.mubr.msk.bf16.vlgmr.msra.gmra.mrb[0].mxu0 %vm1611_vm11, %v1560_v45  ;;  %v2553_v57 = vpop.permute.xlu1 %2552  ;;  %v520_v14 = vrot.slane %v290_v25, 1  ;;  %v2535_v52 = vunpack.i.h.bf16 %v3795_v10  ;;  %v2534_v13 = vunpack.i.l.bf16 %v3795_v10  ;;  %v1336_v62 = vsel %vm1328_vm4, %v1303_v3, %v2385_v32 }
  0xf9   : > { %v1335_v60 = vsel %vm1328_vm4, %v1302_v20, %v2384_v35  ;;  %v2545_v9 = vunpack.i.h.bf16 %v2543_v55  ;;  %v2544_v58 = vunpack.i.l.bf16 %v2543_v55  ;;  %v1334_v54 = vsel %vm1328_vm4, %v1301_v21, %v2380_v56 }
  0xfa   : > { %v2548_v46 = vpop.permute.xlu0 %2547  ;;  %2842 = vrot.lane.b32.xlu1 %v3728_v47, %s2944_s4  ;;  %v1333_v12 = vsel %vm1328_vm4, %v1300_v53, %v2379_v44  ;;  %v2555_v26 = vunpack.i.h.bf16 %v2553_v57  ;;  %v2554_v59 = vunpack.i.l.bf16 %v2553_v57  ;;  %v1367_v10 = vsel %vm1361_vm5, %v1334_v54, %v2460_v23 }
  0xfb   : > { %v1366_v31 = vsel %vm1361_vm5, %v1333_v12, %v2459_v22  ;;  %v2465_v19 = vunpack.i.h.bf16 %v3664_v40  ;;  %v1400_v49 = vsel %vm1394_vm6, %v1367_v10, %v2535_v52  ;;  %v2540_v16 = vunpack.i.h.bf16 %v3831_v7 }
  0xfc   : > { %2837 = vrot.lane.b32.xlu0 %v3700_v63, %s2944_s4  ;;  %v2563_v15 = vpop.permute.xlu1 %2562  ;;  %v1368_v63 = vsel %vm1361_vm5, %v1335_v60, %v2464_v2  ;;  %v1399_v1 = vsel %vm1394_vm6, %v1366_v31, %v2534_v13  ;;  %v1433_v30 = vsel %vm1427_vm7, %v1400_v49, %v2545_v9  ;;  %v2539_v61 = vunpack.i.l.bf16 %v3831_v7 }
  0xfd   : > { %v2565_v24 = vunpack.i.h.bf16 %v2563_v15  ;;  %v2564_v39 = vunpack.i.l.bf16 %v2563_v15  ;;  %v1432_v55 = vsel %vm1427_vm7, %v1399_v1, %v2544_v58  ;;  %v1466_v43 = vsel %vm1460_vm8, %v1433_v30, %v2555_v26 }
  0xfe   : > { %v2558_v11 = vpop.permute.xlu0 %2557  ;;  %2852 = vrot.lane.b32.xlu1 %v3279_v28, %s2945_s7  ;;  %v1465_v40 = vsel %vm1460_vm8, %v1432_v55, %v2554_v59  ;;  %v2550_v32 = vunpack.i.h.bf16 %v2548_v46  ;;  %v2549_v35 = vunpack.i.l.bf16 %v2548_v46  ;;  %v1369_v22 = vsel %vm1361_vm5, %v1336_v62, %v2465_v19 }
  0xff   : > { %v1498_v57 = vsel %vm1493_vm9, %v1465_v40, %v2564_v39  ;;  %v1499_v56 = vsel %vm1493_vm9, %v1466_v43, %v2565_v24  ;;  %v2560_v7 = vunpack.i.h.bf16 %v2558_v11  ;;  %v2559_v3 = vunpack.i.l.bf16 %v2558_v11  ;;  %v4533_v40 = vld [vmem:[#allocation38_spill] sm:$0xff] }
 0x100   : > { %2847 = vrot.lane.b32.xlu0 %v3291_v37, %s2945_s7  ;;  %v2573_v45 = vpop.permute.xlu1 %2572  ;;  %v1402_v13 = vsel %vm1394_vm6, %v1369_v22, %v2540_v16  ;;  %v1401_v60 = vsel %vm1394_vm6, %v1368_v63, %v2539_v61  ;;  %v3908_v9 = vsel %vm339_vm0, %v517_v50, %v518_v4  ;;  %v3911_v58 = vsel %vm339_vm0, %v518_v4, %v520_v14 }
 0x101   : > { %v2575_v21 = vunpack.i.h.bf16 %v2573_v45  ;;  %v2574_v53 = vunpack.i.l.bf16 %v2573_v45  ;;  %v2315_v62 = vunpack.i.h.bf16 %v3526_v5  ;;  %v1434_v15 = vsel %vm1427_vm7, %v1401_v60, %v2549_v35 }
 0x102   : > { %v2568_v44 = vpop.permute.xlu0 %2567  ;;  %2862 = vrot.lane.b32.xlu1 %v3428_v27, %s2946_s8  ;;  %v1435_v54 = vsel %vm1427_vm7, %v1402_v13, %v2550_v32  ;;  %v1467_v50 = vsel %vm1460_vm8, %v1434_v15, %v2559_v3  ;;  %v523_v24 = vrot.slane %v3828_v36, 2  ;;  %v525_v39 = vrot.slane %v290_v25, 2  ;;  %v4534_v32 = vld [vmem:[#allocation37_spill] sm:$0xff] }
 0x103   : > { %v1531_v37 = vsel %vm1526_vm10, %v1498_v57, %v2574_v53  ;;  %v1532_v23 = vsel %vm1526_vm10, %v1499_v56, %v2575_v21  ;;  %v2570_v2 = vunpack.i.h.bf16 %v2568_v44  ;;  %v2569_v52 = vunpack.i.l.bf16 %v2568_v44 }
 0x104   : > { %v1561_v20 = vpack.c.bf16 %v1532_v23, %v1531_v37  ;;  %2857 = vrot.lane.b32.xlu0 %v3435_v29, %s2946_s8  ;;  %v3903_v46 = vpop.permute.xlu1 %2582  ;;  %v522_v29 = vrot.slane %v3826_v0, 2  ;;  %v1468_v26 = vsel %vm1460_vm8, %v1435_v54, %v2560_v7  ;;  %v2314_v11 = vunpack.i.l.bf16 %v3526_v5 }
 0x105   : > { %v1500_v59 = vsel %vm1493_vm9, %v1467_v50, %v2569_v52  ;;  %v1501_v31 = vsel %vm1493_vm9, %v1468_v26, %v2570_v2  ;;  %v2310_v19 = vunpack.i.h.bf16 %v3530_v33  ;;  %v2309_v49 = vunpack.i.l.bf16 %v3530_v33 }
 0x106   : > { %v2578_v12 = vpop.permute.xlu0 %2577  ;;  %2872 = vrot.lane.b32.xlu1 %v3733_v8, %s2941_s20  ;;  %2229 = vmatprep.mubr.msk.bf16.mxu0 %vm1611_vm11, %v1561_v20  ;;  %v2901_v5 = vpack.i.bf16 %v3828_v36, %v3826_v0  ;;  %v1307_v18 = vsel %vm1295_vm3, %v3049_v42, %v2315_v62  ;;  %v2911_v25 = vpack.i.bf16 %v3911_v58, %v3908_v9  ;;  %v2395_v33 = vunpack.i.h.bf16 %v3590_v17 }
 0x107   : > { %v2580_v4 = vunpack.i.h.bf16 %v2578_v12  ;;  %v2579_v14 = vunpack.i.l.bf16 %v2578_v12  ;;  %v2394_v16 = vunpack.i.l.bf16 %v3590_v17  ;;  %v3957_v0 = vsel %vm420_vm1, %v523_v24, %v525_v39 }
 0x108   : > { %2867 = vrot.lane.b32.xlu0 %v3728_v47, %s2941_s20  ;;  %v2593_v10 = vpop.permute.xlu1 %2592  ;;  %v3940_v47 = vpack.i.bf16 %v3844_v38, %v3841_v48  ;;  %v3954_v38 = vsel %vm420_vm1, %v522_v29, %v523_v24  ;;  %v1306_v42 = vsel %vm1295_vm3, %v3047_v41, %v2314_v11  ;;  %v1305_v36 = vsel %vm1295_vm3, %v3065_v51, %v2310_v19 }
 0x109   : > { %v1533_v63 = vsel %vm1526_vm10, %v1500_v59, %v2579_v14  ;;  %v1534_v1 = vsel %vm1526_vm10, %v1501_v31, %v2580_v4  ;;  %v2390_v17 = vunpack.i.h.bf16 %v3592_v34  ;;  %v2389_v61 = vunpack.i.l.bf16 %v3592_v34 }
 0x10a   : > { %v1562_v55 = vpack.c.bf16 %v1534_v1, %v1533_v63  ;;  %v3934_v30 = vpop.permute.xlu0 %2587  ;;  %2882 = vrot.lane.b32.xlu1 %v3836_v6, %s2942_s25  ;;  %v2470_v43 = vunpack.i.h.bf16 %v4533_v40  ;;  %v2469_v21 = vunpack.i.l.bf16 %v4533_v40  ;;  %v2474_v41 = vunpack.i.l.bf16 %v4534_v32 }
 0x10b   : > { %v2585_v35 = vunpack.i.h.bf16 %v3903_v46  ;;  %v2584_v51 = vunpack.i.l.bf16 %v3903_v46  ;;  %v2921_v34 = vpack.i.bf16 %v3957_v0, %v3954_v38  ;;  %v1340_v57 = vsel %vm1328_vm4, %v1307_v18, %v2395_v33 }
 0x10c   : > { %2877 = vrot.lane.b32.xlu0 %v3279_v28, %s2942_s25  ;;  %2230 = vmatmul.mubr.msk.bf16.gmra.mrb[4].mxu0 %vm1611_vm11, %v1562_v55  ;;  %v2603_v48 = vpop.permute.xlu1 %2602  ;;  %v4532_v28 = vld [vmem:[#allocation6_spill] sm:$0xff]  ;;  %v1339_v56 = vsel %vm1328_vm4, %v1306_v42, %v2394_v16  ;;  %v2595_v44 = vunpack.i.h.bf16 %v2593_v10  ;;  %v2594_v7 = vunpack.i.l.bf16 %v2593_v10  ;;  %v1338_v23 = vsel %vm1328_vm4, %v1305_v36, %v2390_v17 }
 0x10d   : > { %v1304_v45 = vsel %vm1295_vm3, %v4532_v28, %v2309_v49  ;;  %v2605_v22 = vunpack.i.h.bf16 %v2603_v48  ;;  %v2604_v20 = vunpack.i.l.bf16 %v2603_v48  ;;  %v1371_v52 = vsel %vm1361_vm5, %v1338_v23, %v2470_v43  ;;  %v4538_v23 = vld [vmem:[#allocation8_spill] sm:$0xff] }
 0x10e   : > { %v2598_v53 = vpop.permute.xlu0 %2597  ;;  %2892 = vrot.lane.b32.xlu1 %v3940_v47, %s2943_s28  ;;  %v1337_v37 = vsel %vm1328_vm4, %v1304_v45, %v2389_v61  ;;  %v2475_v9 = vunpack.i.h.bf16 %v4534_v32  ;;  %v1404_v62 = vsel %vm1394_vm6, %v1371_v52, %v2585_v35  ;;  %v2590_v12 = vunpack.i.h.bf16 %v3934_v30  ;;  %v4535_v32 = vld [vmem:[#allocation2_spill] sm:$0xff] }
 0x10f   : > { %v1370_v2 = vsel %vm1361_vm5, %v1337_v37, %v2469_v21  ;;  %v1437_v54 = vsel %vm1427_vm7, %v1404_v62, %v2595_v44  ;;  %v2589_v29 = vunpack.i.l.bf16 %v3934_v30  ;;  %v2600_v31 = vunpack.i.h.bf16 %v2598_v53 }
 0x110   : > { %2887 = vrot.lane.b32.xlu0 %v3428_v27, %s2943_s28  ;;  %v2613_v3 = vpop.permute.xlu1 %2612  ;;  %v1372_v27 = vsel %vm1361_vm5, %v1339_v56, %v2474_v41  ;;  %v1403_v58 = vsel %vm1394_vm6, %v1370_v2, %v2584_v51  ;;  %v1470_v4 = vsel %vm1460_vm8, %v1437_v54, %v2605_v22  ;;  %v2599_v10 = vunpack.i.l.bf16 %v2598_v53  ;;  %v4536_v51 = vld [vmem:[#allocation17_spill] sm:$0xff] }
 0x111   : > { %v2615_v46 = vunpack.i.h.bf16 %v2613_v3  ;;  %v2614_v13 = vunpack.i.l.bf16 %v2613_v3  ;;  %v1436_v15 = vsel %vm1427_vm7, %v1403_v58, %v2594_v7  ;;  %v1373_v49 = vsel %vm1361_vm5, %v1340_v57, %v2475_v9  ;;  %v4537_v3 = vld [vmem:[#allocation9_spill] sm:$0xff] }
 0x112   : > { %v2608_v60 = vpop.permute.xlu0 %2607  ;;  %2902 = vrot.lane.b32.xlu1 %v2901_v5, %s2944_s4  ;;  %v1469_v26 = vsel %vm1460_vm8, %v1436_v15, %v2604_v20  ;;  %v1406_v33 = vsel %vm1394_vm6, %v1373_v49, %v2590_v12  ;;  %v1405_v16 = vsel %vm1394_vm6, %v1372_v27, %v2589_v29  ;;  %v2325_v41 = vunpack.i.h.bf16 %v4535_v32 }
 0x113   : > { %v1502_v24 = vsel %vm1493_vm9, %v1469_v26, %v2614_v13  ;;  %v1503_v39 = vsel %vm1493_vm9, %v1470_v4, %v2615_v46  ;;  %v2610_v19 = vunpack.i.h.bf16 %v2608_v60  ;;  %v2609_v63 = vunpack.i.l.bf16 %v2608_v60 }
 0x114   : > { %2897 = vrot.lane.b32.xlu0 %v3733_v8, %s2944_s4  ;;  %v2623_v50 = vpop.permute.xlu1 %2622  ;;  %v1439_v48 = vsel %vm1427_vm7, %v1406_v33, %v2600_v31  ;;  %v2324_v35 = vunpack.i.l.bf16 %v4535_v32  ;;  %v2404_v57 = vunpack.i.l.bf16 %v4536_v51  ;;  %v1311_v37 = vsel %vm1295_vm3, %v4537_v3, %v2325_v41  ;;  %v4542_v3 = vld [vmem:[#allocation7_spill] sm:$0xff] }
 0x115   : > { %v2625_v14 = vunpack.i.h.bf16 %v2623_v50  ;;  %v2624_v59 = vunpack.i.l.bf16 %v2623_v50  ;;  %v1472_v42 = vsel %vm1460_vm8, %v1439_v48, %v2610_v19 }
 0x116   : > { %v2618_v11 = vpop.permute.xlu0 %2617  ;;  %2912 = vrot.lane.b32.xlu1 %v2911_v25, %s2945_s7  ;;  %v1438_v25 = vsel %vm1427_vm7, %v1405_v16, %v2599_v10  ;;  %v1310_v22 = vsel %vm1295_vm3, %v4538_v23, %v2324_v35  ;;  %v2329_v23 = vunpack.i.l.bf16 %v4542_v3 }
 0x117   : > { %v1535_v8 = vsel %vm1526_vm10, %v1502_v24, %v2624_v59  ;;  %v1536_v1 = vsel %vm1526_vm10, %v1503_v39, %v2625_v14  ;;  %v2620_v30 = vunpack.i.h.bf16 %v2618_v11  ;;  %v2619_v5 = vunpack.i.l.bf16 %v2618_v11  ;;  %v4539_v11 = vld [vmem:[#allocation31_spill] sm:$0xff] }
 0x118   : > { %v1563_v55 = vpack.c.bf16 %v1536_v1, %v1535_v8  ;;  %2907 = vrot.lane.b32.xlu0 %v3836_v6, %s2945_s7  ;;  %v2633_v18 = vpop.permute.xlu1 %2632  ;;  %v1471_v0 = vsel %vm1460_vm8, %v1438_v25, %v2609_v63  ;;  %v1343_v46 = vsel %vm1328_vm4, %v1310_v22, %v2404_v57  ;;  %v4540_v63 = vld [vmem:[#allocation39_spill] sm:$0xff] }
 0x119   : > { %v1504_v17 = vsel %vm1493_vm9, %v1471_v0, %v2619_v5  ;;  %v1505_v61 = vsel %vm1493_vm9, %v1472_v42, %v2620_v30  ;;  %v2634_v44 = vunpack.i.l.bf16 %v2633_v18 }
 0x11a   : > { %v2628_v38 = vpop.permute.xlu0 %2627  ;;  %2922 = vrot.lane.b32.xlu1 %v2921_v34, %s2946_s8  ;;  %2233 = vmatprep.mubr.msk.bf16.mxu0 %vm1611_vm11, %v1563_v55  ;;  %v2405_v34 = vunpack.i.h.bf16 %v4536_v51 }
 0x11b   : > { %v2630_v36 = vunpack.i.h.bf16 %v2628_v38  ;;  %v2629_v6 = vunpack.i.l.bf16 %v2628_v38  ;;  %v1376_v15 = vsel %vm1361_vm5, %v1343_v46, %v2634_v44  ;;  %v4544_v46 = vld [vmem:[#allocation23_spill] sm:$0xff] }
 0x11c   : > { %2917 = vrot.lane.b32.xlu0 %v3940_v47, %s2946_s8  ;;  %v2643_v28 = vpop.permute.xlu1 %2642  ;;  %v2635_v47 = vunpack.i.h.bf16 %v2633_v18  ;;  %v1344_v52 = vsel %vm1328_vm4, %v1311_v37, %v2405_v34  ;;  %v2330_v37 = vunpack.i.h.bf16 %v4542_v3 }
 0x11d   : > { %v1537_v45 = vsel %vm1526_vm10, %v1504_v17, %v2629_v6  ;;  %v1538_v40 = vsel %vm1526_vm10, %v1505_v61, %v2630_v36  ;;  %v2645_v20 = vunpack.i.h.bf16 %v2643_v28  ;;  %v2644_v2 = vunpack.i.l.bf16 %v2643_v28 }
 0x11e   : > { %v1564_v43 = vpack.c.bf16 %v1538_v40, %v1537_v45  ;;  %v2638_v21 = vpop.permute.xlu0 %2637  ;;  %v1377_v62 = vsel %vm1361_vm5, %v1344_v52, %v2635_v47  ;;  %v4541_v47 = vld [vmem:[#allocation4_spill] sm:$0xff] }
 0x11f   : > { %v2640_v60 = vunpack.i.h.bf16 %v2638_v21  ;;  %v2639_v9 = vunpack.i.l.bf16 %v2638_v21  ;;  %v1409_v50 = vsel %vm1394_vm6, %v1376_v15, %v2644_v2  ;;  %v1410_v26 = vsel %vm1394_vm6, %v1377_v62, %v2645_v20  ;;  %v4543_v20 = vld [vmem:[#allocation15_spill] sm:$0xff]  ;;  %v4545_v62 = vld [vmem:[#allocation13_spill] sm:$0xff] }
 0x120   : > { %2234 = vmatmul.mubr.msk.bf16.gmra.mrb[8].mxu0 %vm1611_vm11, %v1564_v43  ;;  %v2653_v53 = vpop.permute.xlu1 %2652  ;;  %v2335_v44 = vunpack.i.h.bf16 %v4541_v47  ;;  %v2415_v2 = vunpack.i.h.bf16 %v4543_v20  ;;  %v2414_v52 = vunpack.i.l.bf16 %v4543_v20 }
 0x121   : > { %v2655_v27 = vunpack.i.h.bf16 %v2653_v53  ;;  %v2654_v58 = vunpack.i.l.bf16 %v2653_v53  ;;  %v1407_v19 = vsel %vm1394_vm6, %v4539_v11, %v2639_v9  ;;  %v1408_v8 = vsel %vm1394_vm6, %v4540_v63, %v2640_v60 }
 0x122   : > { %v2648_v56 = vpop.permute.xlu0 %2647  ;;  %v2409_v60 = vunpack.i.l.bf16 %v4544_v46  ;;  %v1315_v15 = vsel %vm1295_vm3, %v4545_v62, %v2335_v44 }
 0x123   : > { %v2650_v54 = vunpack.i.h.bf16 %v2648_v56  ;;  %v2649_v12 = vunpack.i.l.bf16 %v2648_v56  ;;  %v1442_v1 = vsel %vm1427_vm7, %v1409_v50, %v2654_v58  ;;  %v1443_v49 = vsel %vm1427_vm7, %v1410_v26, %v2655_v27  ;;  %v4548_v26 = vld [vmem:[#allocation14_spill] sm:$0xff] }
 0x124   : > { %v2663_v7 = vpop.permute.xlu1 %2662 }
 0x125   : > { %v2665_v4 = vunpack.i.h.bf16 %v2663_v7  ;;  %v2664_v14 = vunpack.i.l.bf16 %v2663_v7  ;;  %v1440_v55 = vsel %vm1427_vm7, %v1407_v19, %v2649_v12  ;;  %v1441_v30 = vsel %vm1427_vm7, %v1408_v8, %v2650_v54  ;;  %v4546_v54 = vld [vmem:[#allocation12_spill] sm:$0xff] }
 0x126   : > { %v2658_v13 = vpop.permute.xlu0 %2657  ;;  %v2334_v7 = vunpack.i.l.bf16 %v4541_v47 }
 0x127   : > { %v2660_v59 = vunpack.i.h.bf16 %v2658_v13  ;;  %v2659_v31 = vunpack.i.l.bf16 %v2658_v13  ;;  %v1475_v16 = vsel %vm1460_vm8, %v1442_v1, %v2664_v14  ;;  %v1476_v25 = vsel %vm1460_vm8, %v1443_v49, %v2665_v4 }
 0x128   : > { %v2673_v29 = vpop.permute.xlu1 %2672  ;;  %v2410_v13 = vunpack.i.h.bf16 %v4544_v46  ;;  %v1314_v12 = vsel %vm1295_vm3, %v4546_v54, %v2334_v7  ;;  %v1312_v4 = vsel %vm1295_vm3, %v4548_v26, %v2329_v23  ;;  %v4549_v26 = vld [vmem:[#allocation3_spill] sm:$0xff] }
 0x129   : > { %v2675_v10 = vunpack.i.h.bf16 %v2673_v29  ;;  %v2674_v24 = vunpack.i.l.bf16 %v2673_v29  ;;  %v1473_v0 = vsel %vm1460_vm8, %v1440_v55, %v2659_v31  ;;  %v1474_v42 = vsel %vm1460_vm8, %v1441_v30, %v2660_v59  ;;  %v4547_v29 = vld [vmem:[#allocation16_spill] sm:$0xff] }
 0x12a   : > { %v2668_v39 = vpop.permute.xlu0 %2667  ;;  %v1313_v50 = vsel %vm1295_vm3, %v4547_v29, %v2330_v37  ;;  %v1345_v19 = vsel %vm1328_vm4, %v1312_v4, %v2409_v60  ;;  %v2345_v4 = vunpack.i.h.bf16 %v4549_v26 }
 0x12b   : > { %v2670_v5 = vunpack.i.h.bf16 %v2668_v39  ;;  %v2669_v18 = vunpack.i.l.bf16 %v2668_v39  ;;  %v1508_v36 = vsel %vm1493_vm9, %v1475_v16, %v2674_v24  ;;  %v1509_v6 = vsel %vm1493_vm9, %v1476_v25, %v2675_v10 }
 0x12c   : > { %v2683_v33 = vpop.permute.xlu1 %2682  ;;  %v1348_v10 = vsel %vm1328_vm4, %v1315_v15, %v2415_v2  ;;  %v1347_v24 = vsel %vm1328_vm4, %v1314_v12, %v2414_v52  ;;  %v1346_v63 = vsel %vm1328_vm4, %v1313_v50, %v2410_v13 }
 0x12d   : > { %v2685_v48 = vunpack.i.h.bf16 %v2683_v33  ;;  %v2684_v38 = vunpack.i.l.bf16 %v2683_v33  ;;  %v1506_v43 = vsel %vm1493_vm9, %v1473_v0, %v2669_v18  ;;  %v1507_v21 = vsel %vm1493_vm9, %v1474_v42, %v2670_v5 }
 0x12e   : > { %v2678_v17 = vpop.permute.xlu0 %2677 }
 0x12f   : > { %v1541_v61 = vsel %vm1526_vm10, %v1508_v36, %v2684_v38  ;;  %v1542_v28 = vsel %vm1526_vm10, %v1509_v6, %v2685_v48  ;;  %v2680_v45 = vunpack.i.h.bf16 %v2678_v17  ;;  %v2679_v40 = vunpack.i.l.bf16 %v2678_v17 }
 0x130   : > { %v2693_v53 = vpop.permute.xlu1 %2692  ;;  %v1566_v32 = vpack.c.bf16 %v1542_v28, %v1541_v61 }
 0x131   : > { %v1539_v41 = vsel %vm1526_vm10, %v1506_v43, %v2679_v40  ;;  %v1540_v35 = vsel %vm1526_vm10, %v1507_v21, %v2680_v45  ;;  %v2695_v9 = vunpack.i.h.bf16 %v2693_v53  ;;  %v2694_v27 = vunpack.i.l.bf16 %v2693_v53 }
 0x132   : > { %v1565_v51 = vpack.c.bf16 %v1540_v35, %v1539_v41  ;;  %v2688_v34 = vpop.permute.xlu0 %2687 }
 0x133   : > { %v2690_v14 = vunpack.i.h.bf16 %v2688_v34  ;;  %v2689_v59 = vunpack.i.l.bf16 %v2688_v34  ;;  %v1381_v8 = vsel %vm1361_vm5, %v1348_v10, %v2695_v9  ;;  %v1380_v1 = vsel %vm1361_vm5, %v1347_v24, %v2694_v27 }
 0x134   : > { %2237 = vmatprep.mubr.msk.bf16.mxu0 %vm1611_vm11, %v1565_v51  ;;  %v2703_v57 = vpop.permute.xlu1 %2702 }
 0x135   : > { %2238 = vmatmul.mubr.msk.bf16.gmra.mrb[12].mxu0 %vm1611_vm11, %v1566_v32  ;;  %v2705_v39 = vunpack.i.h.bf16 %v2703_v57  ;;  %v2704_v11 = vunpack.i.l.bf16 %v2703_v57  ;;  %v1378_v33 = vsel %vm1361_vm5, %v1345_v19, %v2689_v59  ;;  %v1379_v16 = vsel %vm1361_vm5, %v1346_v63, %v2690_v14  ;;  %v4550_v59 = vld [vmem:[#allocation5_spill] sm:$0xff] }
 0x136   : > { %v2698_v56 = vpop.permute.xlu0 %2697  ;;  %v2344_v14 = vunpack.i.l.bf16 %v4549_v26  ;;  %v2339_v10 = vunpack.i.l.bf16 %v4550_v59  ;;  %v4552_v63 = vld [vmem:[#allocation29_spill] sm:$0xff] }
 0x137   : > { %v2700_v55 = vunpack.i.h.bf16 %v2698_v56  ;;  %v2699_v30 = vunpack.i.l.bf16 %v2698_v56  ;;  %v1413_v0 = vsel %vm1394_vm6, %v1380_v1, %v2704_v11  ;;  %v1414_v42 = vsel %vm1394_vm6, %v1381_v8, %v2705_v39  ;;  %v4551_v39 = vld [vmem:[#allocation20_spill] sm:$0xff] }
 0x138   : > { %v2713_v22 = vpop.permute.xlu1 %2712  ;;  %v2425_v11 = vunpack.i.h.bf16 %v4551_v39  ;;  %v2424_v19 = vunpack.i.l.bf16 %v4551_v39  ;;  %v2420_v8 = vunpack.i.h.bf16 %v4552_v63  ;;  %v2419_v1 = vunpack.i.l.bf16 %v4552_v63 }
 0x139   : > { %v2715_v5 = vunpack.i.h.bf16 %v2713_v22  ;;  %v2714_v18 = vunpack.i.l.bf16 %v2713_v22  ;;  %v1411_v43 = vsel %vm1394_vm6, %v1378_v33, %v2699_v30  ;;  %v1412_v21 = vsel %vm1394_vm6, %v1379_v16, %v2700_v55  ;;  %v4554_v33 = vld [vmem:[#allocation18_spill] sm:$0xff] }
 0x13a   : > { %v2708_v58 = vpop.permute.xlu0 %2707  ;;  %v1318_v16 = vsel %vm1295_vm3, %v4554_v33, %v2344_v14 }
 0x13b   : > { %v2710_v25 = vunpack.i.h.bf16 %v2708_v58  ;;  %v2709_v48 = vunpack.i.l.bf16 %v2708_v58  ;;  %v1446_v53 = vsel %vm1427_vm7, %v1413_v0, %v2714_v18  ;;  %v1447_v32 = vsel %vm1427_vm7, %v1414_v42, %v2715_v5  ;;  %v4553_v5 = vld [vmem:[#allocation19_spill] sm:$0xff] }
 0x13c   : > { %v2723_v31 = vpop.permute.xlu1 %2722  ;;  %v1319_v18 = vsel %vm1295_vm3, %v4553_v5, %v2345_v4 }
 0x13d   : > { %v2725_v36 = vunpack.i.h.bf16 %v2723_v31  ;;  %v2724_v6 = vunpack.i.l.bf16 %v2723_v31  ;;  %v1444_v41 = vsel %vm1427_vm7, %v1411_v43, %v2709_v48  ;;  %v1445_v35 = vsel %vm1427_vm7, %v1412_v21, %v2710_v25  ;;  %v4555_v25 = vld [vmem:[#allocation22_spill] sm:$0xff] }
 0x13e   : > { %v2718_v49 = vpop.permute.xlu0 %2717  ;;  %v2340_v31 = vunpack.i.h.bf16 %v4550_v59 }
 0x13f   : > { %v2720_v17 = vunpack.i.h.bf16 %v2718_v49  ;;  %v2719_v61 = vunpack.i.l.bf16 %v2718_v49  ;;  %v1479_v56 = vsel %vm1460_vm8, %v1446_v53, %v2724_v6  ;;  %v1480_v47 = vsel %vm1460_vm8, %v1447_v32, %v2725_v36 }
 0x140   : > { %v2733_v38 = vpop.permute.xlu1 %2732  ;;  %v1317_v48 = vsel %vm1295_vm3, %v4555_v25, %v2340_v31 }
 0x141   : > { %v2735_v28 = vunpack.i.h.bf16 %v2733_v38  ;;  %v2734_v45 = vunpack.i.l.bf16 %v2733_v38  ;;  %v1477_v3 = vsel %vm1460_vm8, %v1444_v41, %v2719_v61  ;;  %v1478_v37 = vsel %vm1460_vm8, %v1445_v35, %v2720_v17  ;;  %v4556_v38 = vld [vmem:[#allocation21_spill] sm:$0xff] }
 0x142   : > { %v2728_v40 = vpop.permute.xlu0 %2727  ;;  %v1316_v0 = vsel %vm1295_vm3, %v4556_v38, %v2339_v10  ;;  %v1352_v17 = vsel %vm1328_vm4, %v1319_v18, %v2425_v11  ;;  %v1351_v61 = vsel %vm1328_vm4, %v1318_v16, %v2424_v19  ;;  %v1350_v43 = vsel %vm1328_vm4, %v1317_v48, %v2420_v8  ;;  %v4557_v38 = vld [vmem:[#allocation11_spill] sm:$0xff] }
 0x143   : > { %v2730_v51 = vunpack.i.h.bf16 %v2728_v40  ;;  %v2729_v34 = vunpack.i.l.bf16 %v2728_v40  ;;  %v1512_v23 = vsel %vm1493_vm9, %v1479_v56, %v2734_v45  ;;  %v1513_v22 = vsel %vm1493_vm9, %v1480_v47, %v2735_v28 }
 0x144   : > { %v2743_v57 = vpop.permute.xlu1 %2742  ;;  %v1349_v40 = vsel %vm1328_vm4, %v1316_v0, %v2419_v1  ;;  %v2355_v0 = vunpack.i.h.bf16 %v4557_v38 }
 0x145   : > { %v2745_v44 = vunpack.i.h.bf16 %v2743_v57  ;;  %v2744_v7 = vunpack.i.l.bf16 %v2743_v57  ;;  %v1510_v9 = vsel %vm1493_vm9, %v1477_v3, %v2729_v34  ;;  %v1511_v27 = vsel %vm1493_vm9, %v1478_v37, %v2730_v51 }
 0x146   : > { %v2738_v20 = vpop.permute.xlu0 %2737 }
 0x147   : > { %v1545_v2 = vsel %vm1526_vm10, %v1512_v23, %v2744_v7  ;;  %v1546_v52 = vsel %vm1526_vm10, %v1513_v22, %v2745_v44  ;;  %v2740_v46 = vunpack.i.h.bf16 %v2738_v20  ;;  %v2739_v13 = vunpack.i.l.bf16 %v2738_v20 }
 0x148   : > { %v2753_v60 = vpop.permute.xlu1 %2752  ;;  %v1568_v58 = vpack.c.bf16 %v1546_v52, %v1545_v2 }
 0x149   : > { %v1543_v62 = vsel %vm1526_vm10, %v1510_v9, %v2739_v13  ;;  %v1544_v15 = vsel %vm1526_vm10, %v1511_v27, %v2740_v46  ;;  %v2755_v49 = vunpack.i.h.bf16 %v2753_v60  ;;  %v2754_v55 = vunpack.i.l.bf16 %v2753_v60 }
 0x14a   : > { %v2748_v54 = vpop.permute.xlu0 %2747  ;;  %v1567_v12 = vpack.c.bf16 %v1544_v15, %v1543_v62 }
 0x14b   : > { %v2750_v42 = vunpack.i.h.bf16 %v2748_v54  ;;  %v2749_v36 = vunpack.i.l.bf16 %v2748_v54  ;;  %v1385_v21 = vsel %vm1361_vm5, %v1352_v17, %v2755_v49  ;;  %v1384_v53 = vsel %vm1361_vm5, %v1351_v61, %v2754_v55 }
 0x14c   : > { %2241 = vmatprep.mubr.msk.bf16.mxu1 %vm1611_vm11, %v1567_v12  ;;  %v2763_v29 = vpop.permute.xlu1 %2762 }
 0x14d   : > { %2242 = vmatmul.mubr.msk.bf16.vlgmr.msra.gmra.mrb[0].mxu1 %vm1611_vm11, %v1568_v58  ;;  %v2765_v28 = vunpack.i.h.bf16 %v2763_v29  ;;  %v2764_v45 = vunpack.i.l.bf16 %v2763_v29  ;;  %v1382_v57 = vsel %vm1361_vm5, %v1349_v40, %v2749_v36  ;;  %v1383_v56 = vsel %vm1361_vm5, %v1350_v43, %v2750_v42  ;;  %v4558_v36 = vld [vmem:[#allocation10_spill] sm:$0xff]  ;;  %v4560_v43 = vld [vmem:[#allocation33_spill] sm:$0xff] }
 0x14e   : > { %v2758_v50 = vpop.permute.xlu0 %2757  ;;  %v2354_v42 = vunpack.i.l.bf16 %v4557_v38  ;;  %v2349_v17 = vunpack.i.l.bf16 %v4558_v36 }
 0x14f   : > { %v2760_v41 = vunpack.i.h.bf16 %v2758_v50  ;;  %v2759_v35 = vunpack.i.l.bf16 %v2758_v50  ;;  %v1417_v3 = vsel %vm1394_vm6, %v1384_v53, %v2764_v45  ;;  %v1418_v37 = vsel %vm1394_vm6, %v1385_v21, %v2765_v28  ;;  %v4559_v28 = vld [vmem:[#allocation32_spill] sm:$0xff] }
 0x150   : > { %v2773_v24 = vpop.permute.xlu1 %2772  ;;  %v2435_v45 = vunpack.i.h.bf16 %v4559_v28  ;;  %v2434_v40 = vunpack.i.l.bf16 %v4559_v28  ;;  %v2430_v21 = vunpack.i.h.bf16 %v4560_v43  ;;  %v2429_v53 = vunpack.i.l.bf16 %v4560_v43 }
 0x151   : > { %v2775_v51 = vunpack.i.h.bf16 %v2773_v24  ;;  %v2774_v34 = vunpack.i.l.bf16 %v2773_v24  ;;  %v1415_v60 = vsel %vm1394_vm6, %v1382_v57, %v2759_v35  ;;  %v1416_v9 = vsel %vm1394_vm6, %v1383_v56, %v2760_v41  ;;  %v4562_v57 = vld [vmem:[#allocation24_spill] sm:$0xff] }
 0x152   : > { %v2768_v30 = vpop.permute.xlu0 %2767  ;;  %v1322_v56 = vsel %vm1295_vm3, %v4562_v57, %v2354_v42 }
 0x153   : > { %v2770_v47 = vunpack.i.h.bf16 %v2768_v30  ;;  %v2769_v44 = vunpack.i.l.bf16 %v2768_v30  ;;  %v1450_v27 = vsel %vm1427_vm7, %v1417_v3, %v2774_v34  ;;  %v1451_v58 = vsel %vm1427_vm7, %v1418_v37, %v2775_v51  ;;  %v4561_v51 = vld [vmem:[#allocation25_spill] sm:$0xff] }
 0x154   : > { %v2783_v6 = vpop.permute.xlu1 %2782  ;;  %v1323_v34 = vsel %vm1295_vm3, %v4561_v51, %v2355_v0 }
 0x155   : > { %v2785_v23 = vunpack.i.h.bf16 %v2783_v6  ;;  %v2784_v22 = vunpack.i.l.bf16 %v2783_v6  ;;  %v1448_v62 = vsel %vm1427_vm7, %v1415_v60, %v2769_v44  ;;  %v1449_v15 = vsel %vm1427_vm7, %v1416_v9, %v2770_v47  ;;  %v4563_v47 = vld [vmem:[#allocation28_spill] sm:$0xff] }
 0x156   : > { %v2778_v32 = vpop.permute.xlu0 %2777  ;;  %v2350_v6 = vunpack.i.h.bf16 %v4558_v36 }
 0x157   : > { %v2780_v20 = vunpack.i.h.bf16 %v2778_v32  ;;  %v2779_v2 = vunpack.i.l.bf16 %v2778_v32  ;;  %v1483_v50 = vsel %vm1460_vm8, %v1450_v27, %v2784_v22  ;;  %v1484_v26 = vsel %vm1460_vm8, %v1451_v58, %v2785_v23 }
 0x158   : > { %v2793_v7 = vpop.permute.xlu1 %2792  ;;  %v1321_v44 = vsel %vm1295_vm3, %v4563_v47, %v2350_v6 }
 0x159   : > { %v2795_v52 = vunpack.i.h.bf16 %v2793_v7  ;;  %v2794_v46 = vunpack.i.l.bf16 %v2793_v7  ;;  %v1481_v59 = vsel %vm1460_vm8, %v1448_v62, %v2779_v2  ;;  %v1482_v31 = vsel %vm1460_vm8, %v1449_v15, %v2780_v20  ;;  %v4564_v7 = vld [vmem:[#allocation26_spill] sm:$0xff] }
 0x15a   : > { %v2788_v13 = vpop.permute.xlu0 %2787  ;;  %v1320_v3 = vsel %vm1295_vm3, %v4564_v7, %v2349_v17  ;;  %v1356_v20 = vsel %vm1328_vm4, %v1323_v34, %v2435_v45  ;;  %v1355_v2 = vsel %vm1328_vm4, %v1322_v56, %v2434_v40  ;;  %v1354_v60 = vsel %vm1328_vm4, %v1321_v44, %v2430_v21 }
 0x15b   : > { %v2790_v54 = vunpack.i.h.bf16 %v2788_v13  ;;  %v2789_v12 = vunpack.i.l.bf16 %v2788_v13  ;;  %v1516_v10 = vsel %vm1493_vm9, %v1483_v50, %v2794_v46  ;;  %v1517_v24 = vsel %vm1493_vm9, %v1484_v26, %v2795_v52 }
 0x15c   : > { %v2803_v29 = vpop.permute.xlu1 %2802  ;;  %v1353_v13 = vsel %vm1328_vm4, %v1320_v3, %v2429_v53 }
 0x15d   : > { %v2805_v4 = vunpack.i.h.bf16 %v2803_v29  ;;  %v2804_v14 = vunpack.i.l.bf16 %v2803_v29  ;;  %v1514_v1 = vsel %vm1493_vm9, %v1481_v59, %v2789_v12  ;;  %v1515_v49 = vsel %vm1493_vm9, %v1482_v31, %v2790_v54 }
 0x15e   : > { %v2798_v39 = vpop.permute.xlu0 %2797 }
 0x15f   : > { %v1549_v11 = vsel %vm1526_vm10, %v1516_v10, %v2804_v14  ;;  %v1550_v19 = vsel %vm1526_vm10, %v1517_v24, %v2805_v4  ;;  %v2800_v63 = vunpack.i.h.bf16 %v2798_v39  ;;  %v2799_v8 = vunpack.i.l.bf16 %v2798_v39 }
 0x160   : > { %v2813_v55 = vpop.permute.xlu1 %2812  ;;  %v1570_v30 = vpack.c.bf16 %v1550_v19, %v1549_v11 }
 0x161   : > { %v1547_v5 = vsel %vm1526_vm10, %v1514_v1, %v2799_v8  ;;  %v1548_v18 = vsel %vm1526_vm10, %v1515_v49, %v2800_v63  ;;  %v2815_v32 = vunpack.i.h.bf16 %v2813_v55  ;;  %v2814_v41 = vunpack.i.l.bf16 %v2813_v55 }
 0x162   : > { %v1569_v33 = vpack.c.bf16 %v1548_v18, %v1547_v5  ;;  %v2808_v16 = vpop.permute.xlu0 %2807 }
 0x163   : > { %v2810_v37 = vunpack.i.h.bf16 %v2808_v16  ;;  %v2809_v23 = vunpack.i.l.bf16 %v2808_v16  ;;  %v1389_v9 = vsel %vm1361_vm5, %v1356_v20, %v2815_v32  ;;  %v1388_v27 = vsel %vm1361_vm5, %v1355_v2, %v2814_v41 }
 0x164   : > { %2245 = vmatprep.mubr.msk.bf16.mxu1 %vm1611_vm11, %v1569_v33  ;;  %v2823_v25 = vpop.permute.xlu1 %2822 }
 0x165   : > { %2246 = vmatmul.mubr.msk.bf16.gmra.mrb[4].mxu1 %vm1611_vm11, %v1570_v30  ;;  %v2825_v52 = vunpack.i.h.bf16 %v2823_v25  ;;  %v2824_v46 = vunpack.i.l.bf16 %v2823_v25  ;;  %v1386_v29 = vsel %vm1361_vm5, %v1353_v13, %v2809_v23  ;;  %v1387_v50 = vsel %vm1361_vm5, %v1354_v60, %v2810_v37  ;;  %v4565_v13 = vld [vmem:[#allocation27_spill] sm:$0xff] }
 0x166   : > { %v2818_v48 = vpop.permute.xlu0 %2817 }
 0x167   : > { %v2820_v62 = vunpack.i.h.bf16 %v2818_v48  ;;  %v2819_v15 = vunpack.i.l.bf16 %v2818_v48  ;;  %v1421_v59 = vsel %vm1394_vm6, %v1388_v27, %v2824_v46  ;;  %v1422_v31 = vsel %vm1394_vm6, %v1389_v9, %v2825_v52  ;;  %v4566_v9 = vld [vmem:[#allocation34_spill] sm:$0xff] }
 0x168   : > { %v2833_v61 = vpop.permute.xlu1 %2832 }
 0x169   : > { %v2835_v54 = vunpack.i.h.bf16 %v2833_v61  ;;  %v2834_v12 = vunpack.i.l.bf16 %v2833_v61  ;;  %v1419_v1 = vsel %vm1394_vm6, %v1386_v29, %v2819_v15  ;;  %v1420_v49 = vsel %vm1394_vm6, %v1387_v50, %v2820_v62  ;;  %v4567_v29 = vld [vmem:[#allocation35_spill] sm:$0xff] }
 0x16a   : > { %v2828_v35 = vpop.permute.xlu0 %2827 }
 0x16b   : > { %v2830_v26 = vunpack.i.h.bf16 %v2828_v35  ;;  %v2829_v4 = vunpack.i.l.bf16 %v2828_v35  ;;  %v1454_v55 = vsel %vm1427_vm7, %v1421_v59, %v2834_v12  ;;  %v1455_v30 = vsel %vm1427_vm7, %v1422_v31, %v2835_v54 }
 0x16c   : > { %v2843_v22 = vpop.permute.xlu1 %2842 }
 0x16d   : > { %v2845_v10 = vunpack.i.h.bf16 %v2843_v22  ;;  %v2844_v24 = vunpack.i.l.bf16 %v2843_v22  ;;  %v1452_v5 = vsel %vm1427_vm7, %v1419_v1, %v2829_v4  ;;  %v1453_v18 = vsel %vm1427_vm7, %v1420_v49, %v2830_v26  ;;  %v4568_v26 = vld [vmem:[#allocation36_spill] sm:$0xff] }
 0x16e   : > { %v2838_v58 = vpop.permute.xlu0 %2837 }
 0x16f   : > { %v2840_v39 = vunpack.i.h.bf16 %v2838_v58  ;;  %v2839_v11 = vunpack.i.l.bf16 %v2838_v58  ;;  %v1487_v48 = vsel %vm1460_vm8, %v1454_v55, %v2844_v24  ;;  %v1488_v38 = vsel %vm1460_vm8, %v1455_v30, %v2845_v10 }
 0x170   : > { %v2853_v14 = vpop.permute.xlu1 %2852 }
 0x171   : > { %v2855_v19 = vunpack.i.h.bf16 %v2853_v14  ;;  %v2854_v63 = vunpack.i.l.bf16 %v2853_v14  ;;  %v1485_v36 = vsel %vm1460_vm8, %v1452_v5, %v2839_v11  ;;  %v1486_v6 = vsel %vm1460_vm8, %v1453_v18, %v2840_v39 }
 0x172   : > { %v2848_v8 = vpop.permute.xlu0 %2847 }
 0x173   : > { %v2850_v33 = vunpack.i.h.bf16 %v2848_v8  ;;  %v2849_v16 = vunpack.i.l.bf16 %v2848_v8  ;;  %v1520_v17 = vsel %vm1493_vm9, %v1487_v48, %v2854_v63  ;;  %v1521_v61 = vsel %vm1493_vm9, %v1488_v38, %v2855_v19 }
 0x174   : > { %v2863_v25 = vpop.permute.xlu1 %2862 }
 0x175   : > { %v2865_v0 = vunpack.i.h.bf16 %v2863_v25  ;;  %v2864_v42 = vunpack.i.l.bf16 %v2863_v25  ;;  %v1518_v53 = vsel %vm1493_vm9, %v1485_v36, %v2849_v16  ;;  %v1519_v32 = vsel %vm1493_vm9, %v1486_v6, %v2850_v33 }
 0x176   : > { %v2858_v28 = vpop.permute.xlu0 %2857 }
 0x177   : > { %v1553_v45 = vsel %vm1526_vm10, %v1520_v17, %v2864_v42  ;;  %v1554_v40 = vsel %vm1526_vm10, %v1521_v61, %v2865_v0  ;;  %v2860_v43 = vunpack.i.h.bf16 %v2858_v28  ;;  %v2859_v21 = vunpack.i.l.bf16 %v2858_v28 }
 0x178   : > { %v2873_v41 = vpop.permute.xlu1 %2872  ;;  %v1572_v35 = vpack.c.bf16 %v1554_v40, %v1553_v45 }
 0x179   : > { %v1551_v51 = vsel %vm1526_vm10, %v1518_v53, %v2859_v21  ;;  %v1552_v34 = vsel %vm1526_vm10, %v1519_v32, %v2860_v43  ;;  %v2875_v3 = vunpack.i.h.bf16 %v2873_v41  ;;  %v2874_v37 = vunpack.i.l.bf16 %v2873_v41 }
 0x17a   : > { %v1571_v57 = vpack.c.bf16 %v1552_v34, %v1551_v51  ;;  %v2868_v56 = vpop.permute.xlu0 %2867 }
 0x17b   : > { %v2870_v22 = vunpack.i.h.bf16 %v2868_v56  ;;  %v2869_v20 = vunpack.i.l.bf16 %v2868_v56  ;;  %v1393_v60 = vsel %vm1361_vm5, %v4565_v13, %v2875_v3  ;;  %v1392_v27 = vsel %vm1361_vm5, %v4566_v9, %v2874_v37 }
 0x17c   : > { %2249 = vmatprep.mubr.msk.bf16.mxu1 %vm1611_vm11, %v1571_v57  ;;  %v2883_v47 = vpop.permute.xlu1 %2882 }
 0x17d   : > { %2250 = vmatmul.mubr.msk.bf16.gmra.mrb[8].mxu1 %vm1611_vm11, %v1572_v35  ;;  %v2885_v52 = vunpack.i.h.bf16 %v2883_v47  ;;  %v2884_v46 = vunpack.i.l.bf16 %v2883_v47  ;;  %v1390_v50 = vsel %vm1361_vm5, %v4567_v29, %v2869_v20  ;;  %v1391_v4 = vsel %vm1361_vm5, %v4568_v26, %v2870_v22 }
 0x17e   : > { %v2878_v44 = vpop.permute.xlu0 %2877 }
 0x17f   : > { %v2880_v62 = vunpack.i.h.bf16 %v2878_v44  ;;  %v2879_v15 = vunpack.i.l.bf16 %v2878_v44  ;;  %v1425_v10 = vsel %vm1394_vm6, %v1392_v27, %v2884_v46  ;;  %v1426_v24 = vsel %vm1394_vm6, %v1393_v60, %v2885_v52 }
 0x180   : > { %v2893_v7 = vpop.permute.xlu1 %2892 }
 0x181   : > { %v2895_v54 = vunpack.i.h.bf16 %v2893_v7  ;;  %v2894_v12 = vunpack.i.l.bf16 %v2893_v7  ;;  %v1423_v55 = vsel %vm1394_vm6, %v1390_v50, %v2879_v15  ;;  %v1424_v30 = vsel %vm1394_vm6, %v1391_v4, %v2880_v62 }
 0x182   : > { %v2888_v23 = vpop.permute.xlu0 %2887 }
 0x183   : > { %v2890_v14 = vunpack.i.h.bf16 %v2888_v23  ;;  %v2889_v59 = vunpack.i.l.bf16 %v2888_v23  ;;  %v1458_v5 = vsel %vm1427_vm7, %v1425_v10, %v2894_v12  ;;  %v1459_v18 = vsel %vm1427_vm7, %v1426_v24, %v2895_v54 }
 0x184   : > { %v2903_v2 = vpop.permute.xlu1 %2902 }
 0x185   : > { %v2905_v39 = vunpack.i.h.bf16 %v2903_v2  ;;  %v2904_v11 = vunpack.i.l.bf16 %v2903_v2  ;;  %v1456_v33 = vsel %vm1427_vm7, %v1423_v55, %v2889_v59  ;;  %v1457_v16 = vsel %vm1427_vm7, %v1424_v30, %v2890_v14 }
 0x186   : > { %v2898_v58 = vpop.permute.xlu0 %2897 }
 0x187   : > { %v2900_v19 = vunpack.i.h.bf16 %v2898_v58  ;;  %v2899_v63 = vunpack.i.l.bf16 %v2898_v58  ;;  %v1491_v0 = vsel %vm1460_vm8, %v1458_v5, %v2904_v11  ;;  %v1492_v42 = vsel %vm1460_vm8, %v1459_v18, %v2905_v39 }
 0x188   : > { %v2913_v31 = vpop.permute.xlu1 %2912 }
 0x189   : > { %v2915_v8 = vunpack.i.h.bf16 %v2913_v31  ;;  %v2914_v1 = vunpack.i.l.bf16 %v2913_v31  ;;  %v1489_v17 = vsel %vm1460_vm8, %v1456_v33, %v2899_v63  ;;  %v1490_v61 = vsel %vm1460_vm8, %v1457_v16, %v2900_v19 }
 0x18a   : > { %v2908_v49 = vpop.permute.xlu0 %2907 }
 0x18b   : > { %v2910_v25 = vunpack.i.h.bf16 %v2908_v49  ;;  %v2909_v48 = vunpack.i.l.bf16 %v2908_v49  ;;  %v1524_v28 = vsel %vm1493_vm9, %v1491_v0, %v2914_v1  ;;  %v1525_v45 = vsel %vm1493_vm9, %v1492_v42, %v2915_v8 }
 0x18c   : > { %v2923_v38 = vpop.permute.xlu1 %2922 }
 0x18d   : > { %v2925_v36 = vunpack.i.h.bf16 %v2923_v38  ;;  %v2924_v6 = vunpack.i.l.bf16 %v2923_v38  ;;  %v1522_v41 = vsel %vm1493_vm9, %v1489_v17, %v2909_v48  ;;  %v1523_v35 = vsel %vm1493_vm9, %v1490_v61, %v2910_v25 }
 0x18e   : > { %v2918_v40 = vpop.permute.xlu0 %2917 }
 0x18f   : > { %v1557_v43 = vsel %vm1526_vm10, %v1524_v28, %v2924_v6  ;;  %v1558_v21 = vsel %vm1526_vm10, %v1525_v45, %v2925_v36  ;;  %v2920_v53 = vunpack.i.h.bf16 %v2918_v40  ;;  %v2919_v32 = vunpack.i.l.bf16 %v2918_v40 }
 0x190   : > { %v1574_v51 = vpack.c.bf16 %v1558_v21, %v1557_v43 }
 0x191   : > { %v1555_v34 = vsel %vm1526_vm10, %v1522_v41, %v2919_v32  ;;  %v1556_v57 = vsel %vm1526_vm10, %v1523_v35, %v2920_v53 }
 0x192   : > { %v1573_v56 = vpack.c.bf16 %v1556_v57, %v1555_v34 }
 0x194   : > { %2253 = vmatprep.mubr.msk.bf16.mxu1 %vm1611_vm11, %v1573_v56 }
 0x195   : > { %2254 = vmatmul.mubr.msk.bf16.gmra.mrb[12].mxu1 %vm1611_vm11, %v1574_v51 }
 0x1cb   : > { %v2227_v47 = vpop.f32.mrb[0].mxu0 }
 0x1cc   : > { %1827 = vst.msk [vmem:[%s4228_s14 + $0x10] sm:$0xff] %vm1295_vm3, %v2227_v47  ;;  %v1698_v44 = vpop.f32.mrb[1].mxu0  ;;  %v1928_v23 = vmul.f32 %v2227_v47, %v2227_v47  ;;  %v1860_v46 = vsel %vm1295_vm3, %v2227_v47, 0.0 }
 0x1cd   : > { %1825 = vst.msk [vmem:[%s4228_s14] sm:$0xff] %vm1295_vm3, %v1698_v44  ;;  %v1926_v7 = vmul.f32 %v1698_v44, %v1698_v44  ;;  %v2228_v3 = vpop.f32.mrb[2].mxu0  ;;  %v1857_v22 = vsel %vm1295_vm3, %v1698_v44, 0.0 }
 0x1ce   : > { %1828 = vst.msk [vmem:[%s4228_s14 + $0x18] sm:$0xff] %vm1295_vm3, %v2228_v3  ;;  %v1701_v37 = vpop.f32.mrb[3].mxu0  ;;  %v1929_v60 = vmul.f32 %v2228_v3, %v2228_v3  ;;  %v1961_v62 = vsel %vm1295_vm3, %v1928_v23, 0.0  ;;  %v1862_v15 = vsel %vm1295_vm3, %v2228_v3, 0.0 }
 0x1cf   : > { %1826 = vst.msk [vmem:[%s4228_s14 + $0x8] sm:$0xff] %vm1295_vm3, %v1701_v37  ;;  %v1858_v20 = vsel %vm1295_vm3, %v1701_v37, 0.0  ;;  %v1927_v2 = vmul.f32 %v1701_v37, %v1701_v37  ;;  %v1958_v13 = vsel %vm1295_vm3, %v1926_v7, 0.0 }
 0x1d0   : > { %v1859_v52 = vadd.f32 %v1858_v20, %v1857_v22  ;;  %v1963_v29 = vsel %vm1295_vm3, %v1929_v60, 0.0 }
 0x1d1   : > { %v1959_v9 = vsel %vm1295_vm3, %v1927_v2, 0.0 }
 0x1d2   : > { %v1861_v27 = vadd.f32 %v1860_v46, %v1859_v52  ;;  %v1960_v58 = vadd.f32 %v1959_v9, %v1958_v13 }
 0x1d4   : > { %v1962_v54 = vadd.f32 %v1961_v62, %v1960_v58  ;;  %v1863_v12 = vadd.f32 %v1862_v15, %v1861_v27 }
 0x1d6   : > { %v1964_v50 = vadd.f32 %v1963_v29, %v1962_v54 }
 0x1df   : > { %v2231_v26 = vpop.f32.mrb[4].mxu0 }
 0x1e0   : > { %1831 = vst.msk [vmem:[%s4228_s14 + $0x30] sm:$0xff] %vm1295_vm3, %v2231_v26  ;;  %v1714_v4 = vpop.f32.mrb[5].mxu0  ;;  %v1932_v39 = vmul.f32 %v2231_v26, %v2231_v26  ;;  %v1868_v49 = vsel %vm1295_vm3, %v2231_v26, 0.0 }
 0x1e1   : > { %1829 = vst.msk [vmem:[%s4228_s14 + $0x20] sm:$0xff] %vm1295_vm3, %v1714_v4  ;;  %v1864_v14 = vsel %vm1295_vm3, %v1714_v4, 0.0  ;;  %v1930_v59 = vmul.f32 %v1714_v4, %v1714_v4  ;;  %v2232_v31 = vpop.f32.mrb[6].mxu0 }
 0x1e2   : > { %v1865_v10 = vadd.f32 %v1864_v14, %v1863_v12  ;;  %1832 = vst.msk [vmem:[%s4228_s14 + $0x38] sm:$0xff] %vm1295_vm3, %v2232_v31  ;;  %v1717_v24 = vpop.f32.mrb[7].mxu0  ;;  %v1933_v55 = vmul.f32 %v2232_v31, %v2232_v31  ;;  %v1969_v33 = vsel %vm1295_vm3, %v1932_v39, 0.0  ;;  %v1870_v16 = vsel %vm1295_vm3, %v2232_v31, 0.0 }
 0x1e3   : > { %v1965_v11 = vsel %vm1295_vm3, %v1930_v59, 0.0  ;;  %1830 = vst.msk [vmem:[%s4228_s14 + $0x28] sm:$0xff] %vm1295_vm3, %v1717_v24  ;;  %v1866_v19 = vsel %vm1295_vm3, %v1717_v24, 0.0  ;;  %v1931_v63 = vmul.f32 %v1717_v24, %v1717_v24 }
 0x1e4   : > { %v1966_v8 = vadd.f32 %v1965_v11, %v1964_v50  ;;  %v1867_v1 = vadd.f32 %v1866_v19, %v1865_v10  ;;  %v1971_v38 = vsel %vm1295_vm3, %v1933_v55, 0.0 }
 0x1e5   : > { %v1967_v30 = vsel %vm1295_vm3, %v1931_v63, 0.0 }
 0x1e6   : > { %v1869_v5 = vadd.f32 %v1868_v49, %v1867_v1  ;;  %v1968_v18 = vadd.f32 %v1967_v30, %v1966_v8 }
 0x1e8   : > { %v1970_v25 = vadd.f32 %v1969_v33, %v1968_v18  ;;  %v1871_v48 = vadd.f32 %v1870_v16, %v1869_v5 }
 0x1ea   : > { %v1972_v0 = vadd.f32 %v1971_v38, %v1970_v25 }
 0x1f3   : > { %v2235_v42 = vpop.f32.mrb[8].mxu0 }
 0x1f4   : > { %1835 = vst.msk [vmem:[%s4228_s14 + $0x50] sm:$0xff] %vm1295_vm3, %v2235_v42  ;;  %v1730_v36 = vpop.f32.mrb[9].mxu0  ;;  %v1936_v40 = vmul.f32 %v2235_v42, %v2235_v42  ;;  %v1876_v35 = vsel %vm1295_vm3, %v2235_v42, 0.0 }
 0x1f5   : > { %1833 = vst.msk [vmem:[%s4228_s14 + $0x40] sm:$0xff] %vm1295_vm3, %v1730_v36  ;;  %v1872_v6 = vsel %vm1295_vm3, %v1730_v36, 0.0  ;;  %v1934_v17 = vmul.f32 %v1730_v36, %v1730_v36  ;;  %v2236_v61 = vpop.f32.mrb[10].mxu0 }
 0x1f6   : > { %v1873_v28 = vadd.f32 %v1872_v6, %v1871_v48  ;;  %1836 = vst.msk [vmem:[%s4228_s14 + $0x58] sm:$0xff] %vm1295_vm3, %v2236_v61  ;;  %v1733_v45 = vpop.f32.mrb[11].mxu0  ;;  %v1937_v51 = vmul.f32 %v2236_v61, %v2236_v61  ;;  %v1977_v47 = vsel %vm1295_vm3, %v1936_v40, 0.0  ;;  %v1878_v44 = vsel %vm1295_vm3, %v2236_v61, 0.0 }
 0x1f7   : > { %v1973_v43 = vsel %vm1295_vm3, %v1934_v17, 0.0  ;;  %1834 = vst.msk [vmem:[%s4228_s14 + $0x48] sm:$0xff] %vm1295_vm3, %v1733_v45  ;;  %v1874_v21 = vsel %vm1295_vm3, %v1733_v45, 0.0  ;;  %v1935_v53 = vmul.f32 %v1733_v45, %v1733_v45 }
 0x1f8   : > { %v1974_v32 = vadd.f32 %v1973_v43, %v1972_v0  ;;  %v1875_v41 = vadd.f32 %v1874_v21, %v1873_v28  ;;  %v1979_v37 = vsel %vm1295_vm3, %v1937_v51, 0.0 }
 0x1f9   : > { %v1975_v34 = vsel %vm1295_vm3, %v1935_v53, 0.0 }
 0x1fa   : > { %v1877_v57 = vadd.f32 %v1876_v35, %v1875_v41  ;;  %v1976_v56 = vadd.f32 %v1975_v34, %v1974_v32 }
 0x1fc   : > { %v1978_v7 = vadd.f32 %v1977_v47, %v1976_v56  ;;  %v1879_v3 = vadd.f32 %v1878_v44, %v1877_v57 }
 0x1fe   : > { %v1980_v23 = vadd.f32 %v1979_v37, %v1978_v7 }
 0x208   : > { %v2239_v22 = vpop.f32.mrb[12].mxu0 }
 0x209   : > { %1839 = vst.msk [vmem:[%s4228_s14 + $0x70] sm:$0xff] %vm1295_vm3, %v2239_v22  ;;  %v1746_v20 = vpop.f32.mrb[13].mxu0  ;;  %v1940_v9 = vmul.f32 %v2239_v22, %v2239_v22  ;;  %v1884_v12 = vsel %vm1295_vm3, %v2239_v22, 0.0 }
 0x20a   : > { %1837 = vst.msk [vmem:[%s4228_s14 + $0x60] sm:$0xff] %vm1295_vm3, %v1746_v20  ;;  %v1880_v2 = vsel %vm1295_vm3, %v1746_v20, 0.0  ;;  %v1938_v52 = vmul.f32 %v1746_v20, %v1746_v20  ;;  %v2240_v46 = vpop.f32.mrb[14].mxu0 }
 0x20b   : > { %v1881_v13 = vadd.f32 %v1880_v2, %v1879_v3  ;;  %1840 = vst.msk [vmem:[%s4228_s14 + $0x78] sm:$0xff] %vm1295_vm3, %v2240_v46  ;;  %v1749_v60 = vpop.f32.mrb[15].mxu0  ;;  %v1941_v29 = vmul.f32 %v2240_v46, %v2240_v46  ;;  %v1985_v14 = vsel %vm1295_vm3, %v1940_v9, 0.0  ;;  %v1886_v59 = vsel %vm1295_vm3, %v2240_v46, 0.0 }
 0x20c   : > { %v1981_v27 = vsel %vm1295_vm3, %v1938_v52, 0.0  ;;  %1838 = vst.msk [vmem:[%s4228_s14 + $0x68] sm:$0xff] %vm1295_vm3, %v1749_v60  ;;  %v1882_v58 = vsel %vm1295_vm3, %v1749_v60, 0.0  ;;  %v1939_v62 = vmul.f32 %v1749_v60, %v1749_v60 }
 0x20d   : > { %v1982_v15 = vadd.f32 %v1981_v27, %v1980_v23  ;;  %v1883_v54 = vadd.f32 %v1882_v58, %v1881_v13  ;;  %v1987_v24 = vsel %vm1295_vm3, %v1941_v29, 0.0 }
 0x20e   : > { %v1983_v50 = vsel %vm1295_vm3, %v1939_v62, 0.0 }
 0x20f   : > { %v1885_v26 = vadd.f32 %v1884_v12, %v1883_v54  ;;  %v1984_v4 = vadd.f32 %v1983_v50, %v1982_v15 }
 0x211   : > { %v1986_v31 = vadd.f32 %v1985_v14, %v1984_v4  ;;  %v1887_v10 = vadd.f32 %v1886_v59, %v1885_v26 }
 0x213   : > { %v1988_v39 = vadd.f32 %v1987_v24, %v1986_v31 }
 0x220   : > { %v2243_v11 = vpop.f32.mrb[0].mxu1 }
 0x221   : > { %1843 = vst.msk [vmem:[%s4228_s14 + $0x90] sm:$0xff] %vm1295_vm3, %v2243_v11  ;;  %v1762_v19 = vpop.f32.mrb[1].mxu1  ;;  %v1944_v30 = vmul.f32 %v2243_v11, %v2243_v11  ;;  %v1892_v48 = vsel %vm1295_vm3, %v2243_v11, 0.0 }
 0x222   : > { %1841 = vst.msk [vmem:[%s4228_s14 + $0x80] sm:$0xff] %vm1295_vm3, %v1762_v19  ;;  %v1888_v63 = vsel %vm1295_vm3, %v1762_v19, 0.0  ;;  %v1942_v8 = vmul.f32 %v1762_v19, %v1762_v19  ;;  %v2244_v1 = vpop.f32.mrb[2].mxu1 }
 0x223   : > { %v1889_v49 = vadd.f32 %v1888_v63, %v1887_v10  ;;  %1844 = vst.msk [vmem:[%s4228_s14 + $0x98] sm:$0xff] %vm1295_vm3, %v2244_v1  ;;  %v1765_v55 = vpop.f32.mrb[3].mxu1  ;;  %v1945_v38 = vmul.f32 %v2244_v1, %v2244_v1  ;;  %v1993_v6 = vsel %vm1295_vm3, %v1944_v30, 0.0  ;;  %v1894_v17 = vsel %vm1295_vm3, %v2244_v1, 0.0 }
 0x224   : > { %v1989_v5 = vsel %vm1295_vm3, %v1942_v8, 0.0  ;;  %1842 = vst.msk [vmem:[%s4228_s14 + $0x88] sm:$0xff] %vm1295_vm3, %v1765_v55  ;;  %v1890_v18 = vsel %vm1295_vm3, %v1765_v55, 0.0  ;;  %v1943_v33 = vmul.f32 %v1765_v55, %v1765_v55 }
 0x225   : > { %v1990_v16 = vadd.f32 %v1989_v5, %v1988_v39  ;;  %v1891_v25 = vadd.f32 %v1890_v18, %v1889_v49  ;;  %v1995_v45 = vsel %vm1295_vm3, %v1945_v38, 0.0 }
 0x226   : > { %v1991_v0 = vsel %vm1295_vm3, %v1943_v33, 0.0 }
 0x227   : > { %v1893_v42 = vadd.f32 %v1892_v48, %v1891_v25  ;;  %v1992_v36 = vadd.f32 %v1991_v0, %v1990_v16 }
 0x229   : > { %v1994_v61 = vadd.f32 %v1993_v6, %v1992_v36  ;;  %v1895_v28 = vadd.f32 %v1894_v17, %v1893_v42 }
 0x22b   : > { %v1996_v40 = vadd.f32 %v1995_v45, %v1994_v61 }
 0x238   : > { %v2247_v43 = vpop.f32.mrb[4].mxu1 }
 0x239   : > { %1847 = vst.msk [vmem:[%s4228_s14 + $0xb0] sm:$0xff] %vm1295_vm3, %v2247_v43  ;;  %v1778_v21 = vpop.f32.mrb[5].mxu1  ;;  %v1948_v34 = vmul.f32 %v2247_v43, %v2247_v43  ;;  %v1900_v3 = vsel %vm1295_vm3, %v2247_v43, 0.0 }
 0x23a   : > { %1845 = vst.msk [vmem:[%s4228_s14 + $0xa0] sm:$0xff] %vm1295_vm3, %v1778_v21  ;;  %v1896_v53 = vsel %vm1295_vm3, %v1778_v21, 0.0  ;;  %v1946_v32 = vmul.f32 %v1778_v21, %v1778_v21  ;;  %v2248_v41 = vpop.f32.mrb[6].mxu1 }
 0x23b   : > { %v1897_v35 = vadd.f32 %v1896_v53, %v1895_v28  ;;  %1848 = vst.msk [vmem:[%s4228_s14 + $0xb8] sm:$0xff] %vm1295_vm3, %v2248_v41  ;;  %v1781_v51 = vpop.f32.mrb[7].mxu1  ;;  %v1949_v37 = vmul.f32 %v2248_v41, %v2248_v41  ;;  %v2001_v2 = vsel %vm1295_vm3, %v1948_v34, 0.0  ;;  %v1902_v52 = vsel %vm1295_vm3, %v2248_v41, 0.0 }
 0x23c   : > { %v1997_v57 = vsel %vm1295_vm3, %v1946_v32, 0.0  ;;  %1846 = vst.msk [vmem:[%s4228_s14 + $0xa8] sm:$0xff] %vm1295_vm3, %v1781_v51  ;;  %v1898_v56 = vsel %vm1295_vm3, %v1781_v51, 0.0  ;;  %v1947_v47 = vmul.f32 %v1781_v51, %v1781_v51 }
 0x23d   : > { %v1998_v44 = vadd.f32 %v1997_v57, %v1996_v40  ;;  %v1899_v7 = vadd.f32 %v1898_v56, %v1897_v35  ;;  %v2003_v60 = vsel %vm1295_vm3, %v1949_v37, 0.0 }
 0x23e   : > { %v1999_v23 = vsel %vm1295_vm3, %v1947_v47, 0.0 }
 0x23f   : > { %v1901_v22 = vadd.f32 %v1900_v3, %v1899_v7  ;;  %v2000_v20 = vadd.f32 %v1999_v23, %v1998_v44 }
 0x241   : > { %v2002_v46 = vadd.f32 %v2001_v2, %v2000_v20  ;;  %v1903_v13 = vadd.f32 %v1902_v52, %v1901_v22 }
 0x243   : > { %v2004_v9 = vadd.f32 %v2003_v60, %v2002_v46 }
 0x250   : > { %v2251_v27 = vpop.f32.mrb[8].mxu1 }
 0x251   : > { %1851 = vst.msk [vmem:[%s4228_s14 + $0xd0] sm:$0xff] %vm1295_vm3, %v2251_v27  ;;  %v1794_v58 = vpop.f32.mrb[9].mxu1  ;;  %v1952_v50 = vmul.f32 %v2251_v27, %v2251_v27  ;;  %v1908_v10 = vsel %vm1295_vm3, %v2251_v27, 0.0 }
 0x252   : > { %1849 = vst.msk [vmem:[%s4228_s14 + $0xc0] sm:$0xff] %vm1295_vm3, %v1794_v58  ;;  %v1904_v62 = vsel %vm1295_vm3, %v1794_v58, 0.0  ;;  %v1950_v15 = vmul.f32 %v1794_v58, %v1794_v58  ;;  %v2252_v54 = vpop.f32.mrb[10].mxu1 }
 0x253   : > { %v1905_v12 = vadd.f32 %v1904_v62, %v1903_v13  ;;  %1852 = vst.msk [vmem:[%s4228_s14 + $0xd8] sm:$0xff] %vm1295_vm3, %v2252_v54  ;;  %v1797_v29 = vpop.f32.mrb[11].mxu1  ;;  %v1953_v24 = vmul.f32 %v2252_v54, %v2252_v54  ;;  %v2009_v63 = vsel %vm1295_vm3, %v1952_v50, 0.0  ;;  %v1910_v8 = vsel %vm1295_vm3, %v2252_v54, 0.0 }
 0x254   : > { %v2005_v26 = vsel %vm1295_vm3, %v1950_v15, 0.0  ;;  %1850 = vst.msk [vmem:[%s4228_s14 + $0xc8] sm:$0xff] %vm1295_vm3, %v1797_v29  ;;  %v1906_v4 = vsel %vm1295_vm3, %v1797_v29, 0.0  ;;  %v1951_v14 = vmul.f32 %v1797_v29, %v1797_v29 }
 0x255   : > { %v2006_v59 = vadd.f32 %v2005_v26, %v2004_v9  ;;  %v1907_v31 = vadd.f32 %v1906_v4, %v1905_v12  ;;  %v2011_v55 = vsel %vm1295_vm3, %v1953_v24, 0.0 }
 0x256   : > { %v2007_v39 = vsel %vm1295_vm3, %v1951_v14, 0.0 }
 0x257   : > { %v1909_v11 = vadd.f32 %v1908_v10, %v1907_v31  ;;  %v2008_v19 = vadd.f32 %v2007_v39, %v2006_v59 }
 0x259   : > { %v2010_v1 = vadd.f32 %v2009_v63, %v2008_v19  ;;  %v1911_v49 = vadd.f32 %v1910_v8, %v1909_v11 }
 0x25b   : > { %v2012_v30 = vadd.f32 %v2011_v55, %v2010_v1 }
 0x268   : > { %v2255_v5 = vpop.f32.mrb[12].mxu1 }
 0x269   : > { %1855 = vst.msk [vmem:[%s4228_s14 + $0xf0] sm:$0xff] %vm1295_vm3, %v2255_v5  ;;  %v1810_v18 = vpop.f32.mrb[13].mxu1  ;;  %v1956_v0 = vmul.f32 %v2255_v5, %v2255_v5  ;;  %v1916_v28 = vsel %vm1295_vm3, %v2255_v5, 0.0 }
 0x26a   : > { %1853 = vst.msk [vmem:[%s4228_s14 + $0xe0] sm:$0xff] %vm1295_vm3, %v1810_v18  ;;  %v1912_v33 = vsel %vm1295_vm3, %v1810_v18, 0.0  ;;  %v1954_v16 = vmul.f32 %v1810_v18, %v1810_v18  ;;  %v2256_v25 = vpop.f32.mrb[14].mxu1 }
 0x26b   : > { %v1913_v48 = vadd.f32 %v1912_v33, %v1911_v49  ;;  %1856 = vst.msk [vmem:[%s4228_s14 + $0xf8] sm:$0xff] %vm1295_vm3, %v2256_v25  ;;  %v1813_v38 = vpop.f32.mrb[15].mxu1  ;;  %v1957_v45 = vmul.f32 %v2256_v25, %v2256_v25  ;;  %v2017_v53 = vsel %vm1295_vm3, %v1956_v0, 0.0  ;;  %v1918_v32 = vsel %vm1295_vm3, %v2256_v25, 0.0 }
 0x26c   : > { %v2013_v42 = vsel %vm1295_vm3, %v1954_v16, 0.0  ;;  %1854 = vst.msk [vmem:[%s4228_s14 + $0xe8] sm:$0xff] %vm1295_vm3, %v1813_v38  ;;  %v1914_v36 = vsel %vm1295_vm3, %v1813_v38, 0.0  ;;  %v1955_v6 = vmul.f32 %v1813_v38, %v1813_v38 }
 0x26d   : > { %v2014_v17 = vadd.f32 %v2013_v42, %v2012_v30  ;;  %v1915_v61 = vadd.f32 %v1914_v36, %v1913_v48  ;;  %v2019_v51 = vsel %vm1295_vm3, %v1957_v45, 0.0 }
 0x26e   : > { %v2015_v40 = vsel %vm1295_vm3, %v1955_v6, 0.0 }
 0x26f   : > { %v1917_v43 = vadd.f32 %v1916_v28, %v1915_v61  ;;  %v2016_v21 = vadd.f32 %v2015_v40, %v2014_v17 }
 0x271   : > { %v1919_v41 = vadd.f32 %v1918_v32, %v1917_v43  ;;  %v2018_v35 = vadd.f32 %v2017_v53, %v2016_v21 }
 0x273   : > { %v1920_v34 = vrot.slane %v1919_v41, 4  ;;  %v2020_v57 = vadd.f32 %v2019_v51, %v2018_v35 }
 0x275   : > { %v1921_v56 = vadd.f32 %v1920_v34, %v1919_v41  ;;  %v2021_v47 = vrot.slane %v2020_v57, 4 }
 0x277   : > { %v1922_v44 = vrot.slane %v1921_v56, 2  ;;  %v2022_v7 = vadd.f32 %v2021_v47, %v2020_v57 }
 0x279   : > { %v1923_v3 = vadd.f32 %v1922_v44, %v1921_v56  ;;  %v2023_v37 = vrot.slane %v2022_v7, 2 }
 0x27b   : > { %v1924_v23 = vrot.slane %v1923_v3, 1  ;;  %v2024_v22 = vadd.f32 %v2023_v37, %v2022_v7 }
 0x27d   : > { %v2025_v20 = vrot.slane %v2024_v22, 1  ;;  %v1925_v2 = vadd.f32 %v1924_v23, %v1923_v3 }
 0x27f   : > { %v2026_v52 = vadd.f32 %v2025_v20, %v2024_v22 }
 0x281   : > { %v2028_v46 = vsel %vm2027_vm12, %v1925_v2, %v2026_v52 }
 0x282   : > { %2030 = vst.msk [vmem:[%s181_s18] sm:$0x3] %vm2029_vm13, %v2028_v46 }
 0x283 PF: > { %s14_s12 = sadd.s32 1, %s2937_s12  }
 0x284   : > { %p11_p4 = scmp.ge.s32.totalorder %s14_s12, 4  }
 0x286   :  { %13 = sbr.rel (!%p11_p4) target bundleno = 1 (0x1), region = 70 }

</bundles_post_ra>
